<compile_context>
chip_gen: v5e
topology: v5e:2x2
jax: 0.10.0
libtpu: 0.0.40
codegen_flags: <defaults>
</compile_context>

<pallas_src>
import math
import functools

import jax
import jax.numpy as jnp
import numpy as np
from jax.experimental import pallas as pl
from jax.experimental.pallas import tpu as pltpu

SHIFT = math.log(2.0)  # ShiftedSoftplus shift
LANE = 128


def _round_up(v, m):
    return ((v + m - 1) // m) * m


def _ssp(v):  # shifted softplus, matches F.softplus(x) - log(2)
    return jnp.logaddexp(v, 0.0) - SHIFT


# --------------------------------- Pallas kernel -------------------------------------
def _cfconv_scatter_kernel(ea_ref, tgt_ref, xj_ref,
                           w1_ref, b1_ref, w2_ref, b2_ref,
                           agg_ref):
    """One (node block, edge tile) step: edge filter network + scatter-add."""
    e_blk = pl.program_id(1)
    cdt = ea_ref.dtype                              # compute dtype (bf16 or f32)

    # init the resident output accumulator on the first edge tile
    @pl.when(e_blk == 0)
    def _():
        agg_ref[...] = jnp.zeros_like(agg_ref)

    # filter network W = lin(ssp(lin(edge_attr)))  -- cdt operands, f32 accumulation
    h = jnp.dot(ea_ref[...], w1_ref[...],
                preferred_element_type=jnp.float32) + b1_ref[...]            # (TE, F)
    h = _ssp(h)
    W = jnp.dot(h.astype(cdt), w2_ref[...],
                preferred_element_type=jnp.float32) + b2_ref[...]            # (TE, F)

    # message: x_j already gathered + cutoff-scaled in the wrapper (0 for padded edges)
    msg = (xj_ref[...].astype(jnp.float32) * W).astype(cdt)                  # (TE, F)

    # scatter-add into this node block via a pre-transposed one-hot matmul
    TN = agg_ref.shape[0]
    TE = tgt_ref.shape[1]
    row_ids = pl.program_id(0) * TN + jax.lax.broadcasted_iota(jnp.int32, (TN, TE), 0)
    onehot = (tgt_ref[...] == row_ids).astype(cdt)                           # (TN, TE)
    agg_ref[...] += jnp.dot(onehot, msg, preferred_element_type=jnp.float32)


# ----------------------------------- wrapper -----------------------------------------
def interaction_block(x, edge_index, edge_weight, edge_attr, params, cutoff,
                      *, edge_tile=256, node_tile=None,
                      compute_dtype=jnp.bfloat16):
    N, H = x.shape
    E, G = edge_attr.shape
    F = params["lin1_w"].shape[1]
    f32 = jnp.float32
    cdt = compute_dtype

    # tiling / padding (lane dims -> multiples of 128; N -> multiple of 128 too)
    TE = _round_up(edge_tile, LANE)
    TN = _round_up(N if node_tile is None else node_tile, LANE)
    N_pad = _round_up(_round_up(N, LANE), TN)
    G_pad = _round_up(G, LANE)
    F_pad = _round_up(F, LANE)
    E_pad = _round_up(max(E, 1), TE)
    n_node_blocks = N_pad // TN
    n_edge_blocks = E_pad // TE

    # ---- host-side (XLA) pre-compute: lin1, cutoff envelope, row gather -------------
    x1 = jnp.dot(x.astype(f32), params["lin1_w"])                             # (N, F)
    C = 0.5 * (jnp.cos(edge_weight.astype(f32) * (math.pi / cutoff)) + 1.0)   # (E,)
    xj = x1[edge_index[0]] * C[:, None]                                       # (E, F)

    def pad2(a, rows, cols, dtype):
        a = jnp.asarray(a, f32)
        out = jnp.zeros((rows, cols), f32).at[:a.shape[0], :a.shape[1]].set(a)
        return out.astype(dtype)

    ea_p = pad2(edge_attr, E_pad, G_pad, cdt)                                 # (E_pad, G_pad)
    xj_p = pad2(xj, E_pad, F_pad, cdt)                                        # (E_pad, F_pad)
    # target indices in row layout (1, E_pad) so the scatter one-hot is born transposed
    tgt_p = jnp.zeros((1, E_pad), jnp.int32).at[0, :E].set(edge_index[1].astype(jnp.int32))

    w1_p = pad2(params["mlp_w1"], G_pad, F_pad, cdt)
    b1_p = pad2(params["mlp_b1"], 1, F_pad, f32)
    w2_p = pad2(params["mlp_w2"], F_pad, F_pad, cdt)
    b2_p = pad2(params["mlp_b2"], 1, F_pad, f32)

    grid_spec = pltpu.PrefetchScalarGridSpec(
        num_scalar_prefetch=0,
        grid=(n_node_blocks, n_edge_blocks),
        in_specs=[
            pl.BlockSpec((TE, G_pad), lambda n, e: (e, 0)),       # edge_attr tile
            pl.BlockSpec((1, TE), lambda n, e: (0, e)),           # target indices (row layout)
            pl.BlockSpec((TE, F_pad), lambda n, e: (e, 0)),       # gathered, scaled x_j tile
            pl.BlockSpec((G_pad, F_pad), lambda n, e: (0, 0)),    # mlp_w1 (resident)
            pl.BlockSpec((1, F_pad), lambda n, e: (0, 0)),        # mlp_b1
            pl.BlockSpec((F_pad, F_pad), lambda n, e: (0, 0)),    # mlp_w2
            pl.BlockSpec((1, F_pad), lambda n, e: (0, 0)),        # mlp_b2
        ],
        out_specs=pl.BlockSpec((TN, F_pad), lambda n, e: (n, 0)),  # resident over edge axis
    )

    agg = pl.pallas_call(
        _cfconv_scatter_kernel,
        out_shape=jax.ShapeDtypeStruct((N_pad, F_pad), jnp.float32),
        grid_spec=grid_spec,
        compiler_params=pltpu.CompilerParams(
            dimension_semantics=("parallel", "arbitrary"),
            vmem_limit_bytes=32 * 1024 * 1024,
        ),
    )(ea_p, tgt_p, xj_p, w1_p, b1_p, w2_p, b2_p)

    agg = agg[:N, :F]

    # ---- host-side (XLA) finalize: lin2 -> ShiftedSoftplus -> lin --------------------
    x2 = _ssp(jnp.dot(agg, params["lin2_w"]) + params["lin2_b"])
    return jnp.dot(x2, params["lin_w"]) + params["lin_b"]


# ---------------------------- parameter construction ---------------------------------
def _xavier_uniform(key, fan_in, fan_out):
    bound = math.sqrt(6.0 / (fan_in + fan_out))
    # stored as [in, out] (pre-transposed vs. PyTorch's [out, in])
    return jax.random.uniform(key, (fan_in, fan_out), jnp.float32, -bound, bound)


def make_params(key, hidden_channels, num_gaussians, num_filters):
    k = jax.random.split(key, 5)
    return {
        "mlp_w1": _xavier_uniform(k[0], num_gaussians, num_filters),
        "mlp_b1": jnp.zeros((1, num_filters), jnp.float32),
        "mlp_w2": _xavier_uniform(k[1], num_filters, num_filters),
        "mlp_b2": jnp.zeros((1, num_filters), jnp.float32),
        "lin1_w": _xavier_uniform(k[2], hidden_channels, num_filters),
        "lin2_w": _xavier_uniform(k[3], num_filters, hidden_channels),
        "lin2_b": jnp.zeros((1, hidden_channels), jnp.float32),
        "lin_w": _xavier_uniform(k[4], hidden_channels, hidden_channels),
        "lin_b": jnp.zeros((1, hidden_channels), jnp.float32),
    }


# ------------------------------- pure-JAX reference -----------------------------------
def reference(x, edge_index, edge_weight, edge_attr, params, cutoff):
    ssp = lambda v: jnp.logaddexp(v, 0.0) - SHIFT
    h = ssp(edge_attr @ params["mlp_w1"] + params["mlp_b1"])
    W = h @ params["mlp_w2"] + params["mlp_b2"]
    C = 0.5 * (jnp.cos(edge_weight * math.pi / cutoff) + 1.0)
    W = W * C[:, None]
    x1 = x @ params["lin1_w"]
    msg = x1[edge_index[0]] * W
    agg = jax.ops.segment_sum(msg, edge_index[1], num_segments=x.shape[0])
    x2 = ssp(agg @ params["lin2_w"] + params["lin2_b"])
    return x2 @ params["lin_w"] + params["lin_b"]


if __name__ == "__main__":
    # Small shapes consistent with the module.  E chosen so the edge grid has multiple
    # tiles and N so the node grid can have multiple blocks (exercises init /
    # accumulate / writeback on both axes).
    N, H, G, F, E = 200, 32, 16, 32, 600
    cutoff = 10.0

    key = jax.random.PRNGKey(0)
    kx, kw, ka, ks, kt, kp = jax.random.split(key, 6)

    x = jax.random.normal(kx, (N, H), jnp.float32)
    edge_src = jax.random.randint(ks, (E,), 0, N, jnp.int32)
    edge_tgt = jax.random.randint(kt, (E,), 0, N, jnp.int32)
    edge_index = jnp.stack([edge_src, edge_tgt], axis=0)              # [2, E]
    edge_weight = jax.random.uniform(kw, (E,), jnp.float32, 0.1, cutoff)
    edge_attr = jax.random.normal(ka, (E, G), jnp.float32)

    params = make_params(kp, H, G, F)

    ref = reference(x, edge_index, edge_weight, edge_attr, params, cutoff)

    # 1) f32 path (single node block) -- bit-tight check against the f32 reference.
    out_f32 = interaction_block(x, edge_index, edge_weight, edge_attr, params, cutoff,
                                edge_tile=256, node_tile=None,
                                compute_dtype=jnp.float32)
    out_f32 = jax.block_until_ready(out_f32)
    assert out_f32.shape == (N, H)
    np.testing.assert_allclose(np.asarray(out_f32), np.asarray(ref), rtol=1e-5, atol=1e-5)

    # 2) bf16 MXU-operand path with node blocking (v7x 2-TC layout) -- looser tolerance
    #    since msg / edge_attr / filter weights are rounded to bf16 (one-hot stays exact).
    out_bf16 = interaction_block(x, edge_index, edge_weight, edge_attr, params, cutoff,
                                 edge_tile=256, node_tile=128,
                                 compute_dtype=jnp.bfloat16)
    out_bf16 = jax.block_until_ready(out_bf16)
    assert out_bf16.shape == (N, H)
    np.testing.assert_allclose(np.asarray(out_bf16), np.asarray(ref), rtol=5e-2, atol=5e-2)

    print("KERNEL_OK")
</pallas_src>

<mosaic_0001>
module attributes {stable_mosaic.version = 11 : i64} {
  func.func @_cfconv_scatter_kernel(%arg0: i32, %arg1: i32, %arg2: memref<256x128xf32, #tpu.memory_space<vmem>>, %arg3: memref<1x256xi32, #tpu.memory_space<vmem>>, %arg4: memref<256x128xf32, #tpu.memory_space<vmem>>, %arg5: memref<128x128xf32, #tpu.memory_space<vmem>>, %arg6: memref<1x128xf32, #tpu.memory_space<vmem>>, %arg7: memref<128x128xf32, #tpu.memory_space<vmem>>, %arg8: memref<1x128xf32, #tpu.memory_space<vmem>>, %arg9: memref<256x128xf32, #tpu.memory_space<vmem>>) attributes {dimension_semantics = [#tpu.dimension_semantics<parallel>, #tpu.dimension_semantics<arbitrary>], iteration_bounds = array<i64: 1, 3>, scalar_prefetch = 0 : i64, scratch_operands = 0 : i64, tpu.core_type = #tpu.core_type<tc>, window_params = [{transform_indices = @transform_0, window_bounds = array<i64: 256, 128>}, {transform_indices = @transform_1, window_bounds = array<i64: 1, 256>}, {transform_indices = @transform_2, window_bounds = array<i64: 256, 128>}, {pipeline_mode = #tpu.pipeline_mode<synchronous>, transform_indices = @transform_3, window_bounds = array<i64: 128, 128>}, {pipeline_mode = #tpu.pipeline_mode<synchronous>, transform_indices = @transform_4, window_bounds = array<i64: 1, 128>}, {pipeline_mode = #tpu.pipeline_mode<synchronous>, transform_indices = @transform_5, window_bounds = array<i64: 128, 128>}, {pipeline_mode = #tpu.pipeline_mode<synchronous>, transform_indices = @transform_6, window_bounds = array<i64: 1, 128>}, {transform_indices = @transform_7, window_bounds = array<i64: 256, 128>}]} {
    %c0_i32 = arith.constant 0 : i32
    %0 = arith.cmpi eq, %arg1, %c0_i32 : i32
    %1 = arith.extui %0 : i1 to i32
    %c0_i32_0 = arith.constant 0 : i32
    %2 = arith.cmpi ne, %1, %c0_i32_0 : i32
    scf.if %2 {
      %cst_23 = arith.constant 0.000000e+00 : f32
      %45 = vector.broadcast %cst_23 : f32 to vector<256x128xf32>
      %c0_24 = arith.constant 0 : index
      %c0_25 = arith.constant 0 : index
      %46 = vector.load %arg9[%c0_24, %c0_25] : memref<256x128xf32, #tpu.memory_space<vmem>>, vector<256x128xf32>
      tpu.vector_store %arg9[%c0_24, %c0_25], %45 {strides = array<i32>} : memref<256x128xf32, #tpu.memory_space<vmem>>, vector<256x128xf32>,
    } else {
    }
    %c0 = arith.constant 0 : index
    %c0_1 = arith.constant 0 : index
    %3 = vector.load %arg2[%c0, %c0_1] : memref<256x128xf32, #tpu.memory_space<vmem>>, vector<256x128xf32>
    %c0_2 = arith.constant 0 : index
    %c0_3 = arith.constant 0 : index
    %4 = vector.load %arg5[%c0_2, %c0_3] : memref<128x128xf32, #tpu.memory_space<vmem>>, vector<128x128xf32>
    %cst = arith.constant dense<0.000000e+00> : vector<256x128xf32>
    %5 = tpu.matmul %3, %4, %cst {dimension_numbers = #tpu.dot_dimension_numbers<[1], [0], [0], [1], [0, 0, 1, 1], [], []>} : vector<256x128xf32>, vector<128x128xf32>, vector<256x128xf32> -> vector<256x128xf32>
    %c0_4 = arith.constant 0 : index
    %c0_5 = arith.constant 0 : index
    %6 = vector.load %arg6[%c0_4, %c0_5] : memref<1x128xf32, #tpu.memory_space<vmem>>, vector<1x128xf32>
    %7 = vector.broadcast %6 : vector<1x128xf32> to vector<256x128xf32>
    %8 = arith.addf %5, %7 : vector<256x128xf32>
    %cst_6 = arith.constant 0.000000e+00 : f32
    %9 = vector.broadcast %cst_6 : f32 to vector<256x128xf32>
    %10 = arith.maximumf %8, %9 : vector<256x128xf32>
    %11 = vector.broadcast %cst_6 : f32 to vector<256x128xf32>
    %12 = arith.subf %8, %11 : vector<256x128xf32>
    %13 = arith.cmpf one, %12, %12 : vector<256x128xf32>
    %14 = vector.broadcast %cst_6 : f32 to vector<256x128xf32>
    %15 = arith.addf %8, %14 : vector<256x128xf32>
    %16 = math.absf %12 : vector<256x128xf32>
    %cst_7 = arith.constant 0.000000e+00 : f32
    %17 = vector.broadcast %cst_7 : f32 to vector<256x128xf32>
    %18 = arith.subf %17, %16 : vector<256x128xf32>
    %19 = math.exp %18 : vector<256x128xf32>
    %20 = math.log1p %19 : vector<256x128xf32>
    %21 = arith.addf %10, %20 : vector<256x128xf32>
    %22 = arith.select %13, %15, %21 : vector<256x128xi1>, vector<256x128xf32>
    %cst_8 = arith.constant 0.693147182 : f32
    %23 = vector.broadcast %cst_8 : f32 to vector<256x128xf32>
    %24 = arith.subf %22, %23 : vector<256x128xf32>
    %c0_9 = arith.constant 0 : index
    %c0_10 = arith.constant 0 : index
    %25 = vector.load %arg7[%c0_9, %c0_10] : memref<128x128xf32, #tpu.memory_space<vmem>>, vector<128x128xf32>
    %cst_11 = arith.constant dense<0.000000e+00> : vector<256x128xf32>
    %26 = tpu.matmul %24, %25, %cst_11 {dimension_numbers = #tpu.dot_dimension_numbers<[1], [0], [0], [1], [0, 0, 1, 1], [], []>} : vector<256x128xf32>, vector<128x128xf32>, vector<256x128xf32> -> vector<256x128xf32>
    %c0_12 = arith.constant 0 : index
    %c0_13 = arith.constant 0 : index
    %27 = vector.load %arg8[%c0_12, %c0_13] : memref<1x128xf32, #tpu.memory_space<vmem>>, vector<1x128xf32>
    %28 = vector.broadcast %27 : vector<1x128xf32> to vector<256x128xf32>
    %29 = arith.addf %26, %28 : vector<256x128xf32>
    %c0_14 = arith.constant 0 : index
    %c0_15 = arith.constant 0 : index
    %30 = vector.load %arg4[%c0_14, %c0_15] : memref<256x128xf32, #tpu.memory_space<vmem>>, vector<256x128xf32>
    %31 = arith.mulf %30, %29 : vector<256x128xf32>
    %c256_i32 = arith.constant 256 : i32
    %32 = arith.muli %arg0, %c256_i32 : i32
    %33 = tpu.iota {dimensions = array<i32: 0>} : vector<256x256xi32>
    %34 = vector.broadcast %32 : i32 to vector<256x256xi32>
    %35 = arith.addi %34, %33 : vector<256x256xi32>
    %c0_16 = arith.constant 0 : index
    %c0_17 = arith.constant 0 : index
    %36 = vector.load %arg3[%c0_16, %c0_17] : memref<1x256xi32, #tpu.memory_space<vmem>>, vector<1x256xi32>
    %37 = vector.broadcast %36 : vector<1x256xi32> to vector<256x256xi32>
    %38 = arith.cmpi eq, %37, %35 : vector<256x256xi32>
    %39 = arith.extui %38 : vector<256x256xi1> to vector<256x256xi32>
    %40 = arith.sitofp %39 : vector<256x256xi32> to vector<256x256xf32>
    %c0_18 = arith.constant 0 : index
    %c0_19 = arith.constant 0 : index
    %41 = vector.load %arg9[%c0_18, %c0_19] : memref<256x128xf32, #tpu.memory_space<vmem>>, vector<256x128xf32>
    %cst_20 = arith.constant dense<0.000000e+00> : vector<256x128xf32>
    %42 = tpu.matmul %40, %31, %cst_20 {dimension_numbers = #tpu.dot_dimension_numbers<[1], [0], [0], [1], [0, 0, 1, 1], [], []>} : vector<256x256xf32>, vector<256x128xf32>, vector<256x128xf32> -> vector<256x128xf32>
    %43 = arith.addf %41, %42 : vector<256x128xf32>
    %c0_21 = arith.constant 0 : index
    %c0_22 = arith.constant 0 : index
    %44 = vector.load %arg9[%c0_21, %c0_22] : memref<256x128xf32, #tpu.memory_space<vmem>>, vector<256x128xf32>
    tpu.vector_store %arg9[%c0_21, %c0_22], %43 {strides = array<i32>} : memref<256x128xf32, #tpu.memory_space<vmem>>, vector<256x128xf32>,
    return
  }
  func.func @transform_0(%arg0: i32, %arg1: i32) -> (i32, i32) {
    %c0_i32 = arith.constant 0 : i32
    %c0_i32_0 = arith.constant 0 : i32
    return %arg1, %c0_i32 : i32, i32
  }
  func.func @transform_1(%arg0: i32, %arg1: i32) -> (i32, i32) {
    %c0_i32 = arith.constant 0 : i32
    %c0_i32_0 = arith.constant 0 : i32
    return %c0_i32, %arg1 : i32, i32
  }
  func.func @transform_2(%arg0: i32, %arg1: i32) -> (i32, i32) {
    %c0_i32 = arith.constant 0 : i32
    %c0_i32_0 = arith.constant 0 : i32
    return %arg1, %c0_i32 : i32, i32
  }
  func.func @transform_3(%arg0: i32, %arg1: i32) -> (i32, i32) {
    %c0_i32 = arith.constant 0 : i32
    %c0_i32_0 = arith.constant 0 : i32
    %c0_i32_1 = arith.constant 0 : i32
    return %c0_i32, %c0_i32_0 : i32, i32
  }
  func.func @transform_4(%arg0: i32, %arg1: i32) -> (i32, i32) {
    %c0_i32 = arith.constant 0 : i32
    %c0_i32_0 = arith.constant 0 : i32
    %c0_i32_1 = arith.constant 0 : i32
    return %c0_i32, %c0_i32_0 : i32, i32
  }
  func.func @transform_5(%arg0: i32, %arg1: i32) -> (i32, i32) {
    %c0_i32 = arith.constant 0 : i32
    %c0_i32_0 = arith.constant 0 : i32
    %c0_i32_1 = arith.constant 0 : i32
    return %c0_i32, %c0_i32_0 : i32, i32
  }
  func.func @transform_6(%arg0: i32, %arg1: i32) -> (i32, i32) {
    %c0_i32 = arith.constant 0 : i32
    %c0_i32_0 = arith.constant 0 : i32
    %c0_i32_1 = arith.constant 0 : i32
    return %c0_i32, %c0_i32_0 : i32, i32
  }
  func.func @transform_7(%arg0: i32, %arg1: i32) -> (i32, i32) {
    %c0_i32 = arith.constant 0 : i32
    %c0_i32_0 = arith.constant 0 : i32
    return %arg0, %c0_i32 : i32, i32
  }
}

</mosaic_0001>

<bundles_post_ra>
// kernel: tpu_custom_call.1
= control target key start
LH: loop header
LB: loop body
LE: loop exit
PB: predicated region body
PF: predicated region fallthrough
CT: control target
= control target key end

     0   :  { %s3607_s0 = inlined_call_operand.hbm [shape: f32[768,128], index: 0, kind: input, shape index: {}]   ;;  %s3608_s1 = inlined_call_operand.hbm [shape: s32[1,768], index: 1, kind: input, shape index: {}]   ;;  %s3609_s2 = inlined_call_operand.hbm [shape: f32[768,128], index: 2, kind: input, shape index: {}]   ;;  %s3610_s3 = inlined_call_operand.hbm [shape: f32[128,128], index: 3, kind: input, shape index: {}]   ;;  %s3611_s4 = inlined_call_operand.vmem [shape: f32[1,128], index: 4, kind: input, shape index: {}]   ;;  %s3612_s5 = inlined_call_operand.hbm [shape: f32[128,128], index: 5, kind: input, shape index: {}]   ;;  %s3613_s6 = inlined_call_operand.vmem [shape: f32[1,128], index: 6, kind: input, shape index: {}]   ;;  %s3614_s7 = inlined_call_operand.hbm [shape: f32[256,128], index: 7, kind: output, shape index: {}]  }
   0x1   :  { %3621 = sst [smem:[#allocation19_spill]] %s3608_s1 }
   0x2   :  { %3622 = sst [smem:[#allocation20_spill]] %s3610_s3 }
   0x3   :  { %3623 = sst [smem:[#allocation21_spill]] %s3612_s5 }
   0x4   :  { %3624 = sst [smem:[#allocation22_spill]] %s3613_s6 }
   0x5   :  { %3625 = sst [smem:[#allocation23_spill]] %s3614_s7 }
   0x6   :  { %12 = vsyncpa [#allocation3], 0 }
   0x7   :  { %14 = vsyncpa [#allocation3 + $0x1], 0 }
   0x8   :  { %15 = vsyncpa [#allocation6], 0 }
   0x9   :  { %17 = vsyncpa [#allocation6 + $0x1], 0 }
   0xa   :  { %18 = vsyncpa [#allocation9], 0 }
   0xb   :  { %19 = vsyncpa [#allocation4], 0  ;;  %s2853_s24 = smov 0   ;;  %s2855_s25 = smov 0  }
   0xc   :  { %s2857_s26 = smov 0   ;;  %s2859_s27 = smov 0  }
   0xd   :  { %s2861_s28 = smov 0   ;;  %s2863_s29 = smov 0  }
   0xe LB: > { %3626 = sst [smem:[#allocation16_spill]] %s2790_s26  ;;  %s2884_s30 = sadd.s32 4294967295, %s2802_s29   ;;  %s2802_s29 = sphi %s2863_s29, %s25_s29   ;;  %s2798_s28 = sphi %s2861_s28, %s3646_s28   ;;  %s2794_s27 = sphi %s2859_s27, %s3645_s27   ;;  %s2790_s26 = sphi %s2857_s26, %s3641_s26   ;;  %s2786_s25 = sphi %s2855_s25, %s3644_s25   ;;  %s2782_s24 = sphi %s2853_s24, %s3643_s24  }
   0xf   : > { %p2147_p0 = scmp.ge.s32.totalorder %s2802_s29, 1  ;;  %p58_p1 = scmp.eq.s32.totalorder %s2884_s30, 0 }
  0x10   : > { %p230_p2 = scmp.lt.s32.totalorder %s2802_s29, 4  ;;  %s3627_s3 = sld [smem:[#allocation20_spill]] }
  0x11   : > { %s2804_s12 = smov [#allocation8]   ;;  %s3615_s15 = smov 128  }
  0x12   : > { %p2892_p3 = pnand %p2147_p0, %p230_p2  ;;  %s243_s13 = sshll.u32 %s2804_s12, 4  ;;  %s244_s13 = int_to_ptr.vmem [resolvable:$true] %s243_s13 }
  0x13   : > { %s3617_s16 = smov 8   ;;  %s34_s17 = sadd.s32 1, %s2798_s28 }
  0x14   : > { %p2350_p4 = pneg %p2892_p3  ;;  %p35_p6 = scmp.ge.s32.totalorder %s34_s17, 3 }
  0x15   : > { %s44_s18 = sadd.s32 1, %s2790_s26  ;;  %p51_p7 = scmp.ne.s32.totalorder %s2790_s26, %s2786_s25 }
  0x16   : > { %s241_s10 = sshll.u32 %s3627_s3, 4  ;;  %p2900_p5 = pnand %p2350_p4, %p58_p1  ;;  %s242_s10 = int_to_ptr.hbm [resolvable:$true] %s241_s10 }
  0x17   : > { %p52_p8 = scmp.eq.s32.totalorder %s2802_s29, 0  ;;  %s3648_s17 = smov (%p35_p6, %s34_s17), 0 }
  0x18   : > { %2353 = dma.hbm_to_vmem [thread:$0]  (!%p2900_p5), %s242_s10, 2048, %s244_s13, [#allocation9], %s3615_s15, %s3615_s15, %s3617_s16  }
  0x19   : > { %3630 = sst [smem:[#allocation17_spill]] %s3648_s17  ;;  %p53_p9 = por %p52_p8, %p51_p7 }
  0x1a   : > { %p57_p10 = scmp.ne.s32.totalorder %s2786_s25, %s2782_s24  ;;  %s41_s19 = ssub.s32 %s2798_s28, %s3648_s17 }
  0x1b   : > { %p2369_p11 = scmp.lt.s32.totalorder %s2802_s29, 3  ;;  %p42_p12 = scmp.eq.s32.totalorder %s41_s19, 0 }
  0x1c   : > { %p2923_p13 = por %p58_p1, %p57_p10  ;;  %s2928_s21 = sand.u32 1, %s2790_s26  }
  0x1d   : > { %p2930_p0 = pnand %p2369_p11, %p53_p9  ;;  %s2151_s24 = sshll.u32 %s2928_s21, 8 }
  0x1e   : > { %s2935_s23 = scalar_select %p42_p12, %s2790_s26, %s44_s18  }
  0x1f   : > { %s299_s8 = sand.u32 1, %s2802_s29   ;;  %s2154_s9 = sshll.u32 %s2928_s21, 1 }
  0x20   : > { %3633 = sst [smem:[#allocation18_spill]] %s2935_s23  ;;  %s2155_s10 = sshll.u32 %s2798_s28, 1 }
  0x21   : > { %s303_s12 = scalar_lea.vmem [#allocation5], %s2154_s9  ;;  %s3634_s1 = sld [smem:[#allocation19_spill]] }
  0x22   : > { %s311_s13 = sshll.u32 %s303_s12, 4  ;;  %s322_s17 = scalar_lea.vmem [#allocation7], %s2151_s24  ;;  %s312_s13 = int_to_ptr.vmem [resolvable:$true] %s311_s13 }
  0x23   : > { %s330_s7 = sshll.u32 %s322_s17, 4  ;;  %s300_s6 = scalar_lea.sflag [#allocation6], %s299_s8  ;;  %s331_s7 = int_to_ptr.vmem [resolvable:$true] %s330_s7 }
  0x24   : > { %s3635_s5 = sld [smem:[#allocation21_spill]]  ;;  %s2807_s12 = smov [#allocation10]  }
  0x25   : > { %s260_s15 = sshll.u32 %s2807_s12, 4  ;;  %s2330_s17 = sshll.u32 %s2798_s28, 8  ;;  %s261_s15 = int_to_ptr.vmem [resolvable:$true] %s260_s15 }
  0x26   : > { %s281_s8 = scalar_lea.vmem [#allocation2], %s2151_s24  ;;  %s286_s23 = scalar_lea.hbm %s3607_s0, %s2330_s17 }
  0x27   : > { %s307_s16 = scalar_lea.hbm %s3634_s1, %s2155_s10  ;;  %s3637_s10 = smov 128  }
  0x28   : > { %s309_s3 = sshll.u32 %s307_s16, 4  ;;  %s3636_s16 = smov 8   ;;  %s310_s3 = int_to_ptr.hbm [resolvable:$true] %s309_s3 }
  0x29   : > { %2363 = dma.hbm_to_vmem [thread:$0]  (!%p2930_p0), %s310_s3, 32, %s312_s13, %s300_s6  }
  0x2a   : > { %s258_s9 = sshll.u32 %s3635_s5, 4  ;;  %s289_s3 = sshll.u32 %s281_s8, 4  ;;  %s259_s9 = int_to_ptr.hbm [resolvable:$true] %s258_s9  ;;  %s290_s3 = int_to_ptr.vmem [resolvable:$true] %s289_s3 }
  0x2b   : > { %2356 = dma.hbm_to_vmem [thread:$0]  (!%p2900_p5), %s259_s9, 2048, %s261_s15, [#allocation9], %s3637_s10, %s3637_s10, %s3636_s16  }
  0x2c   : > { %s287_s18 = sshll.u32 %s286_s23, 4  ;;  %s327_s26 = scalar_lea.hbm %s3609_s2, %s2330_s17  ;;  %s288_s18 = int_to_ptr.hbm [resolvable:$true] %s287_s18 }
  0x2d   : > { %s328_s12 = sshll.u32 %s327_s26, 4  ;;  %s278_s14 = scalar_lea.sflag [#allocation3], %s2928_s21  ;;  %s329_s12 = int_to_ptr.hbm [resolvable:$true] %s328_s12 }
  0x2e   : > { %2360 = dma.hbm_to_vmem [thread:$0]  (!%p2930_p0), %s288_s18, 4096, %s290_s3, %s278_s14, %s3637_s10, %s3637_s10, %s3636_s16  }
  0x2f   : > { %2366 = dma.hbm_to_vmem [thread:$0]  (!%p2930_p0), %s329_s12, 4096, %s331_s7, %s300_s6, %s3637_s10, %s3637_s10, %s3636_s16  }
  0x30   : > { %342 = sbr.rel (%p2892_p3) target bundleno = 1086 (0x43e), region = 48  ;;  %s344_s1 = sand.u32 (!%p2892_p3), 1, %s2786_s25  }
  0x31   : > { %s2160_s5 = sshll.u32 (!%p2892_p3), %s344_s1, 8  ;;  %s345_s26 = scalar_lea.sflag (!%p2892_p3), [#allocation3], %s344_s1 }
  0x32   : > { %s2975_s21 = scalar_lea.vmem (!%p2892_p3), [#allocation2], %s2160_s5 }
  0x35   : > { %2765 = dma.done.wait (%p2923_p13), %s345_s26, 4096  }
  0x36   : > { %2767 = vsyncadd (%p2923_p13), %s345_s26, 4294963200  ;;  %s354_s22 = sand.u32 1, %s2884_s30   ;;  %s2161_s24 = sshll.u32 %s344_s1, 1 }
  0x37   : > { %s355_s6 = scalar_lea.sflag [#allocation6], %s354_s22  ;;  %s2982_s7 = scalar_lea.vmem [#allocation5], %s2161_s24 }
  0x38   : > { %2769 = dma.done.wait (%p2923_p13), %s355_s6, 4128  }
  0x39   : > { %2771 = vsyncadd (%p2923_p13), %s355_s6, 4294963168  ;;  %s2988_s11 = scalar_lea.vmem [#allocation7], %s2160_s5 }
  0x3a   : > { %2773 = dma.done.wait (%p58_p1), [#allocation9], 4096  }
  0x3b   : > { %2775 = vsyncadd (%p58_p1), [#allocation9], 4294963200  ;;  %p2165_p2 = scmp.ne.s32.totalorder %s2794_s27, 0 }
  0x3d   : > { %422 = sbr.rel (%p2165_p2) target bundleno = 99 (0x63), region = 72 }
  0x42   : > { %v2808_v0 = vmov 0.0  }
  0x43   : > { %423 = vst [vmem:[#allocation11] sm:$0xff] %v2808_v0 }
  0x44   : > { %424 = vst [vmem:[#allocation11 + $0x8] sm:$0xff] %v2808_v0 }
  0x45   : > { %425 = vst [vmem:[#allocation11 + $0x10] sm:$0xff] %v2808_v0 }
  0x46   : > { %426 = vst [vmem:[#allocation11 + $0x18] sm:$0xff] %v2808_v0 }
  0x47   : > { %427 = vst [vmem:[#allocation11 + $0x20] sm:$0xff] %v2808_v0 }
  0x48   : > { %428 = vst [vmem:[#allocation11 + $0x28] sm:$0xff] %v2808_v0 }
  0x49   : > { %429 = vst [vmem:[#allocation11 + $0x30] sm:$0xff] %v2808_v0 }
  0x4a   : > { %430 = vst [vmem:[#allocation11 + $0x38] sm:$0xff] %v2808_v0 }
  0x4b   : > { %431 = vst [vmem:[#allocation11 + $0x40] sm:$0xff] %v2808_v0 }
  0x4c   : > { %432 = vst [vmem:[#allocation11 + $0x48] sm:$0xff] %v2808_v0 }
  0x4d   : > { %433 = vst [vmem:[#allocation11 + $0x50] sm:$0xff] %v2808_v0 }
  0x4e   : > { %434 = vst [vmem:[#allocation11 + $0x58] sm:$0xff] %v2808_v0 }
  0x4f   : > { %435 = vst [vmem:[#allocation11 + $0x60] sm:$0xff] %v2808_v0 }
  0x50   : > { %436 = vst [vmem:[#allocation11 + $0x68] sm:$0xff] %v2808_v0 }
  0x51   : > { %437 = vst [vmem:[#allocation11 + $0x70] sm:$0xff] %v2808_v0 }
  0x52   : > { %438 = vst [vmem:[#allocation11 + $0x78] sm:$0xff] %v2808_v0 }
  0x53   : > { %439 = vst [vmem:[#allocation11 + $0x80] sm:$0xff] %v2808_v0 }
  0x54   : > { %440 = vst [vmem:[#allocation11 + $0x88] sm:$0xff] %v2808_v0 }
  0x55   : > { %441 = vst [vmem:[#allocation11 + $0x90] sm:$0xff] %v2808_v0 }
  0x56   : > { %442 = vst [vmem:[#allocation11 + $0x98] sm:$0xff] %v2808_v0 }
  0x57   : > { %443 = vst [vmem:[#allocation11 + $0xa0] sm:$0xff] %v2808_v0 }
  0x58   : > { %444 = vst [vmem:[#allocation11 + $0xa8] sm:$0xff] %v2808_v0 }
  0x59   : > { %445 = vst [vmem:[#allocation11 + $0xb0] sm:$0xff] %v2808_v0 }
  0x5a   : > { %446 = vst [vmem:[#allocation11 + $0xb8] sm:$0xff] %v2808_v0 }
  0x5b   : > { %447 = vst [vmem:[#allocation11 + $0xc0] sm:$0xff] %v2808_v0 }
  0x5c   : > { %448 = vst [vmem:[#allocation11 + $0xc8] sm:$0xff] %v2808_v0 }
  0x5d   : > { %449 = vst [vmem:[#allocation11 + $0xd0] sm:$0xff] %v2808_v0 }
  0x5e   : > { %450 = vst [vmem:[#allocation11 + $0xd8] sm:$0xff] %v2808_v0 }
  0x5f   : > { %451 = vst [vmem:[#allocation11 + $0xe0] sm:$0xff] %v2808_v0 }
  0x60   : > { %452 = vst [vmem:[#allocation11 + $0xe8] sm:$0xff] %v2808_v0 }
  0x61   : > { %453 = vst [vmem:[#allocation11 + $0xf0] sm:$0xff] %v2808_v0 }
  0x62   : > { %454 = vst [vmem:[#allocation11 + $0xf8] sm:$0xff] %v2808_v0 }
  0x63 PF: > { %v502_v1 = vld [vmem:[#allocation8 + $0x78] sm:$0xff]  ;;  %v501_v2 = vld [vmem:[#allocation8 + $0x70] sm:$0xff]  ;;  %v500_v3 = vld [vmem:[#allocation8 + $0x68] sm:$0xff]  ;;  %s3638_s17 = sld [smem:[#allocation22_spill]]  ;;  %s2810_s8 = smov [#allocation11]  }
  0x64   : > { %507 = vmatpush.msra.mxu0 %v502_v1  ;;  %v499_v4 = vld [vmem:[#allocation8 + $0x60] sm:$0xff]  ;;  %v498_v5 = vld [vmem:[#allocation8 + $0x58] sm:$0xff]  ;;  %v497_v6 = vld [vmem:[#allocation8 + $0x50] sm:$0xff]  ;;  %s2017_s3 = sshll.u32 %s2810_s8, 4  ;;  %s3639_s23 = sld [smem:[#allocation23_spill]]  ;;  %s2018_s3 = int_to_ptr.vmem [resolvable:$true] %s2017_s3 }
  0x65   : > { %v496_v7 = vld [vmem:[#allocation8 + $0x48] sm:$0xff]  ;;  %v495_v8 = vld [vmem:[#allocation8 + $0x40] sm:$0xff]  ;;  %v494_v9 = vld [vmem:[#allocation8 + $0x38] sm:$0xff]  ;;  %p2372_p1 = scmp.eq.s32.totalorder %s2884_s30, 2  ;;  %s2811_s12 = smov 128  }
  0x66   : > { %508 = vmatpush.msra.mxu0 %v501_v2  ;;  %v493_v10 = vld [vmem:[#allocation8 + $0x30] sm:$0xff]  ;;  %v492_v11 = vld [vmem:[#allocation8 + $0x28] sm:$0xff]  ;;  %v491_v12 = vld [vmem:[#allocation8 + $0x20] sm:$0xff]  ;;  %s2812_s14 = smov 8  }
  0x67   : > { %v490_v13 = vld [vmem:[#allocation8 + $0x18] sm:$0xff]  ;;  %v489_v14 = vld [vmem:[#allocation8 + $0x10] sm:$0xff]  ;;  %v488_v15 = vld [vmem:[#allocation8 + $0x8] sm:$0xff] }
  0x68   : > { %509 = vmatpush.msra.mxu0 %v500_v3  ;;  %v487_v16 = vld [vmem:[#allocation8] sm:$0xff]  ;;  %v457_v19 = vld [vmem:[%s2975_s21 + $0x10] sm:$0xff]  ;;  %v458_v20 = vld [vmem:[%s2975_s21 + $0x18] sm:$0xff] }
  0x69   : > { %v455_v17 = vld [vmem:[%s2975_s21] sm:$0xff]  ;;  %v456_v18 = vld [vmem:[%s2975_s21 + $0x8] sm:$0xff]  ;;  %v461_v23 = vld [vmem:[%s2975_s21 + $0x30] sm:$0xff] }
  0x6a   : > { %510 = vmatpush.msra.mxu0 %v499_v4  ;;  %v459_v21 = vld [vmem:[%s2975_s21 + $0x20] sm:$0xff]  ;;  %v460_v22 = vld [vmem:[%s2975_s21 + $0x28] sm:$0xff]  ;;  %v462_v24 = vld [vmem:[%s2975_s21 + $0x38] sm:$0xff]  ;;  %s2019_s18 = sshll.u32 %s3639_s23, 4  ;;  %s2020_s18 = int_to_ptr.hbm [resolvable:$true] %s2019_s18 }
  0x6b   : > { %v463_v25 = vld [vmem:[%s2975_s21 + $0x40] sm:$0xff]  ;;  %v464_v26 = vld [vmem:[%s2975_s21 + $0x48] sm:$0xff]  ;;  %v465_v27 = vld [vmem:[%s2975_s21 + $0x50] sm:$0xff] }
  0x6c   : > { %511 = vmatpush.msra.mxu0 %v498_v5  ;;  %v466_v28 = vld [vmem:[%s2975_s21 + $0x58] sm:$0xff]  ;;  %v467_v29 = vld [vmem:[%s2975_s21 + $0x60] sm:$0xff]  ;;  %v1241_v32 = vld [vmem:[#allocation10 + $0x68] sm:$0xff] }
  0x6d   : > { %v1243_v30 = vld [vmem:[#allocation10 + $0x78] sm:$0xff]  ;;  %v1242_v31 = vld [vmem:[#allocation10 + $0x70] sm:$0xff]  ;;  %v1240_v33 = vld [vmem:[#allocation10 + $0x60] sm:$0xff] }
  0x6e   : > { %512 = vmatpush.msra.mxu0 %v497_v6  ;;  %1248 = vmatpush.msra.mxu1 %v1243_v30  ;;  %v468_v34 = vld [vmem:[%s2975_s21 + $0x68] sm:$0xff]  ;;  %v1239_v35 = vld [vmem:[#allocation10 + $0x58] sm:$0xff]  ;;  %v1238_v36 = vld [vmem:[#allocation10 + $0x50] sm:$0xff] }
  0x6f   : > { %v1237_v37 = vld [vmem:[#allocation10 + $0x48] sm:$0xff]  ;;  %v1236_v38 = vld [vmem:[#allocation10 + $0x40] sm:$0xff]  ;;  %v1235_v40 = vld [vmem:[#allocation10 + $0x38] sm:$0xff] }
  0x70   : > { %513 = vmatpush.msra.mxu0 %v496_v7  ;;  %1249 = vmatpush.msra.mxu1 %v1242_v31  ;;  %v469_v39 = vld [vmem:[%s2975_s21 + $0x70] sm:$0xff]  ;;  %v1232_v43 = vld [vmem:[#allocation10 + $0x20] sm:$0xff]  ;;  %v470_v44 = vld [vmem:[%s2975_s21 + $0x78] sm:$0xff] }
  0x71   : > { %v1234_v41 = vld [vmem:[#allocation10 + $0x30] sm:$0xff]  ;;  %v1233_v42 = vld [vmem:[#allocation10 + $0x28] sm:$0xff]  ;;  %v1231_v45 = vld [vmem:[#allocation10 + $0x18] sm:$0xff] }
  0x72   : > { %514 = vmatpush.msra.mxu0 %v495_v8  ;;  %1250 = vmatpush.msra.mxu1 %v1241_v32  ;;  %v1230_v46 = vld [vmem:[#allocation10 + $0x10] sm:$0xff]  ;;  %v3014_v47 = vld [vmem:[%s3611_s4] ss:$0 sm:$0xff]  ;;  %v1229_v48 = vld [vmem:[#allocation10 + $0x8] sm:$0xff] }
  0x73   : > { %v1228_v49 = vld [vmem:[#allocation10] sm:$0xff]  ;;  %v473_v0 = vld [vmem:[%s2975_s21 + $0x90] sm:$0xff] }
  0x74   : > { %515 = vmatpush.msra.mxu0 %v494_v9  ;;  %1251 = vmatpush.msra.mxu1 %v1240_v33  ;;  %v471_v51 = vld [vmem:[%s2975_s21 + $0x80] sm:$0xff]  ;;  %v472_v57 = vld [vmem:[%s2975_s21 + $0x88] sm:$0xff] }
  0x75   : > { %v475_v31 = vld [vmem:[%s2975_s21 + $0xa0] sm:$0xff] }
  0x76   : > { %516 = vmatpush.msra.mxu0 %v493_v10  ;;  %1252 = vmatpush.msra.mxu1 %v1239_v35 }
  0x78   : > { %517 = vmatpush.msra.mxu0 %v492_v11  ;;  %1253 = vmatpush.msra.mxu1 %v1238_v36 }
  0x7a   : > { %518 = vmatpush.msra.mxu0 %v491_v12  ;;  %1254 = vmatpush.msra.mxu1 %v1237_v37  ;;  %v474_v12 = vld [vmem:[%s2975_s21 + $0x98] sm:$0xff] }
  0x7c   : > { %519 = vmatpush.msra.mxu0 %v490_v13  ;;  %1255 = vmatpush.msra.mxu1 %v1236_v38 }
  0x7e   : > { %520 = vmatpush.msra.mxu0 %v489_v14  ;;  %1256 = vmatpush.msra.mxu1 %v1235_v40 }
  0x80   : > { %521 = vmatpush.msra.mxu0 %v488_v15  ;;  %1257 = vmatpush.msra.mxu1 %v1234_v41 }
  0x82   : > { %522 = vmatpush.msra.mxu0 %v487_v16  ;;  %1258 = vmatpush.msra.mxu1 %v1233_v42 }
  0x83   : > { %523 = vmatmul.f32.vlgmr.msra.gmra.mxu0 %v455_v17 }
  0x84   : > { %1259 = vmatpush.msra.mxu1 %v1232_v43 }
  0x86   : > { %1260 = vmatpush.msra.mxu1 %v1231_v45 }
  0x88   : > { %1261 = vmatpush.msra.mxu1 %v1230_v46 }
  0x8a   : > { %1262 = vmatpush.msra.mxu1 %v1229_v48 }
  0x8b   : > { %526 = vmatmul.f32.gmra.mxu0 %v456_v18 }
  0x8c   : > { %1263 = vmatpush.msra.mxu1 %v1228_v49 }
  0x93   : > { %529 = vmatmul.f32.gmra.mxu0 %v457_v19 }
  0x9b   : > { %532 = vmatmul.f32.gmra.mxu0 %v458_v20 }
  0xa3   : > { %535 = vmatmul.f32.gmra.mxu0 %v459_v21 }
  0xab   : > { %538 = vmatmul.f32.gmra.mxu0 %v460_v22 }
  0xb3   : > { %541 = vmatmul.f32.gmra.mxu0 %v461_v23 }
  0xbb   : > { %544 = vmatmul.f32.gmra.mxu0 %v462_v24 }
  0xc3   : > { %547 = vmatmul.f32.gmra.mxu0 %v463_v25 }
  0xcb   : > { %550 = vmatmul.f32.gmra.mxu0 %v464_v26 }
  0xd3   : > { %553 = vmatmul.f32.gmra.mxu0 %v465_v27 }
  0xdb   : > { %556 = vmatmul.f32.gmra.mxu0 %v466_v28 }
  0xe3   : > { %559 = vmatmul.f32.gmra.mxu0 %v467_v29 }
  0xeb   : > { %562 = vmatmul.f32.gmra.mxu0 %v468_v34 }
  0xf3   : > { %565 = vmatmul.f32.gmra.mxu0 %v469_v39 }
  0xfb   : > { %568 = vmatmul.f32.gmra.mxu0 %v470_v44 }
 0x100   : > { %v524_v50 = vpop.f32.mrf.mxu0 }
 0x101   : > { %v525_v52 = vadd.f32 %v3014_v47, %v524_v50 }
 0x103   : > { %v716_v53 = vand.u32 2147483647, %v525_v52  ;;  %571 = vmatmul.f32.gmra.mxu0 %v471_v51  ;;  %v620_v18 = vmax.f32 %v525_v52, 0.0  ;;  %vm652_vm1 = vcmp.ne.f32.partialorder %v525_v52, %v525_v52  ;;  %v476_v51 = vld [vmem:[%s2975_s21 + $0xa8] sm:$0xff] }
 0x105   : > { %v748_v54 = vsub.f32 0.0, %v716_v53 }
 0x107   : > { %v780_v55 = vmul.f32 1.442695, %v748_v54 }
 0x108   : > { %v527_v56 = vpop.f32.mrf.mxu0 }
 0x109   : > { %2433 = vpow2.f32 %v780_v55  ;;  %v3020_v58 = vadd.f32 %v3014_v47, %v527_v56 }
 0x10b   : > { %v717_v59 = vand.u32 2147483647, %v3020_v58  ;;  %574 = vmatmul.f32.gmra.mxu0 %v472_v57  ;;  %v621_v37 = vmax.f32 %v3020_v58, 0.0  ;;  %vm653_vm3 = vcmp.ne.f32.partialorder %v3020_v58, %v3020_v58 }
 0x10d   : > { %v749_v60 = vsub.f32 0.0, %v717_v59 }
 0x10f   : > { %v2434_v61 = vpop.eup %2433  ;;  %v782_v62 = vmul.f32 1.442695, %v749_v60 }
 0x110   : > { %v530_v63 = vpop.f32.mrf.mxu0  ;;  %v844_v1 = vadd.f32 1.0, %v2434_v61  ;;  %v847_v2 = vmul.f32 -0.5, %v2434_v61  ;;  %v850_v7 = vand.u32 2147483647, %v2434_v61 }
 0x111   : > { %2435 = vpow2.f32 %v782_v62  ;;  %v3025_v3 = vadd.f32 %v3014_v47, %v530_v63 }
 0x112   : > { %2437 = vlog2.f32 %v844_v1  ;;  %v848_v5 = vadd.f32 1.0, %v847_v2  ;;  %vm851_vm0 = vcmp.lt.f32.partialorder %v850_v7, 0.0004427343  ;;  %v477_v7 = vld [vmem:[%s2975_s21 + $0xb0] sm:$0xff] }
 0x113   : > { %v718_v4 = vand.u32 2147483647, %v3025_v3  ;;  %577 = vmatmul.f32.gmra.mxu0 %v473_v0  ;;  %v622_v57 = vmax.f32 %v3025_v3, 0.0  ;;  %vm654_vm5 = vcmp.ne.f32.partialorder %v3025_v3, %v3025_v3 }
 0x114   : > { %v849_v13 = vmul.f32 %v2434_v61, %v848_v5 }
 0x115   : > { %v750_v6 = vsub.f32 0.0, %v718_v4 }
 0x117   : > { %v2436_v8 = vpop.eup %2435  ;;  %v784_v9 = vmul.f32 1.442695, %v750_v6 }
 0x118   : > { %v2438_v10 = vpop.eup %2437  ;;  %v533_v11 = vpop.f32.mrf.mxu0  ;;  %v853_v14 = vadd.f32 1.0, %v2436_v8  ;;  %v856_v17 = vmul.f32 -0.5, %v2436_v8  ;;  %v859_v25 = vand.u32 2147483647, %v2436_v8 }
 0x119   : > { %2439 = vpow2.f32 %v784_v9  ;;  %v3030_v15 = vadd.f32 %v3014_v47, %v533_v11  ;;  %v846_v16 = vmul.f32 0.6931472, %v2438_v10 }
 0x11a   : > { %2441 = vlog2.f32 %v853_v14  ;;  %v857_v23 = vadd.f32 1.0, %v856_v17  ;;  %vm860_vm2 = vcmp.lt.f32.partialorder %v859_v25, 0.0004427343 }
 0x11b   : > { %v719_v19 = vand.u32 2147483647, %v3030_v15  ;;  %580 = vmatmul.f32.gmra.mxu0 %v474_v12  ;;  %v852_v20 = vsel %vm851_vm0, %v849_v13, %v846_v16  ;;  %v623_v13 = vmax.f32 %v3030_v15, 0.0  ;;  %vm655_vm7 = vcmp.ne.f32.partialorder %v3030_v15, %v3030_v15 }
 0x11c   : > { %v1132_v21 = vadd.f32 %v852_v20, %v620_v18  ;;  %v858_v36 = vmul.f32 %v2436_v8, %v857_v23 }
 0x11d   : > { %v751_v22 = vsub.f32 0.0, %v719_v19 }
 0x11e   : > { %v1164_v24 = vsel %vm652_vm1, %v525_v52, %v1132_v21 }
 0x11f   : > { %v2440_v26 = vpop.eup %2439  ;;  %v786_v27 = vmul.f32 1.442695, %v751_v22  ;;  %v2166_v28 = vadd.f32 -0.6931472, %v1164_v24 }
 0x120   : > { %v2442_v29 = vpop.eup %2441  ;;  %v536_v30 = vpop.f32.mrf.mxu0  ;;  %v862_v32 = vadd.f32 1.0, %v2440_v26  ;;  %v865_v33 = vmul.f32 -0.5, %v2440_v26  ;;  %v868_v44 = vand.u32 2147483647, %v2440_v26 }
 0x121   : > { %2443 = vpow2.f32 %v786_v27  ;;  %v3035_v34 = vadd.f32 %v3014_v47, %v536_v30  ;;  %1264 = vmatmul.f32.vlgmr.msra.gmra.mxu1 %v2166_v28  ;;  %v855_v35 = vmul.f32 0.6931472, %v2442_v29 }
 0x122   : > { %2445 = vlog2.f32 %v862_v32  ;;  %v866_v41 = vadd.f32 1.0, %v865_v33  ;;  %vm869_vm4 = vcmp.lt.f32.partialorder %v868_v44, 0.0004427343 }
 0x123   : > { %v720_v38 = vand.u32 2147483647, %v3035_v34  ;;  %583 = vmatmul.f32.gmra.mxu0 %v475_v31  ;;  %v861_v39 = vsel %vm860_vm2, %v858_v36, %v855_v35  ;;  %v624_v32 = vmax.f32 %v3035_v34, 0.0  ;;  %vm656_vm9 = vcmp.ne.f32.partialorder %v3035_v34, %v3035_v34 }
 0x124   : > { %v1133_v40 = vadd.f32 %v861_v39, %v621_v37  ;;  %v867_v52 = vmul.f32 %v2440_v26, %v866_v41  ;;  %v478_v26 = vld [vmem:[%s2975_s21 + $0xb8] sm:$0xff] }
 0x125   : > { %v752_v42 = vsub.f32 0.0, %v720_v38 }
 0x126   : > { %v1165_v43 = vsel %vm653_vm3, %v3020_v58, %v1133_v40 }
 0x127   : > { %v2444_v45 = vpop.eup %2443  ;;  %v788_v46 = vmul.f32 1.442695, %v752_v42  ;;  %v2167_v48 = vadd.f32 -0.6931472, %v1165_v43 }
 0x128   : > { %v2446_v49 = vpop.eup %2445  ;;  %v539_v50 = vpop.f32.mrf.mxu0  ;;  %v871_v53 = vadd.f32 1.0, %v2444_v45  ;;  %v874_v56 = vmul.f32 -0.5, %v2444_v45  ;;  %v877_v0 = vand.u32 2147483647, %v2444_v45 }
 0x129   : > { %2447 = vpow2.f32 %v788_v46  ;;  %v3044_v54 = vadd.f32 %v3014_v47, %v539_v50  ;;  %1267 = vmatmul.f32.gmra.mxu1 %v2167_v48  ;;  %v864_v55 = vmul.f32 0.6931472, %v2446_v49 }
 0x12a   : > { %2449 = vlog2.f32 %v871_v53  ;;  %v875_v62 = vadd.f32 1.0, %v874_v56  ;;  %vm878_vm6 = vcmp.lt.f32.partialorder %v877_v0, 0.0004427343 }
 0x12b   : > { %v721_v58 = vand.u32 2147483647, %v3044_v54  ;;  %586 = vmatmul.f32.gmra.mxu0 %v476_v51  ;;  %v870_v59 = vsel %vm869_vm4, %v867_v52, %v864_v55  ;;  %v625_v52 = vmax.f32 %v3044_v54, 0.0  ;;  %vm657_vm11 = vcmp.ne.f32.partialorder %v3044_v54, %v3044_v54 }
 0x12c   : > { %v1134_v60 = vadd.f32 %v870_v59, %v622_v57  ;;  %v876_v12 = vmul.f32 %v2444_v45, %v875_v62  ;;  %v479_v45 = vld [vmem:[%s2975_s21 + $0xc0] sm:$0xff] }
 0x12d   : > { %v753_v61 = vsub.f32 0.0, %v721_v58 }
 0x12e   : > { %v1166_v63 = vsel %vm654_vm5, %v3025_v3, %v1134_v60 }
 0x12f   : > { %v2448_v1 = vpop.eup %2447  ;;  %v790_v2 = vmul.f32 1.442695, %v753_v61  ;;  %v2168_v4 = vadd.f32 -0.6931472, %v1166_v63 }
 0x130   : > { %v2450_v5 = vpop.eup %2449  ;;  %v542_v6 = vpop.f32.mrf.mxu0  ;;  %v880_v8 = vadd.f32 1.0, %v2448_v1  ;;  %v883_v9 = vmul.f32 -0.5, %v2448_v1  ;;  %v886_v20 = vand.u32 2147483647, %v2448_v1 }
 0x131   : > { %2451 = vpow2.f32 %v790_v2  ;;  %v3053_v10 = vadd.f32 %v3014_v47, %v542_v6  ;;  %1270 = vmatmul.f32.gmra.mxu1 %v2168_v4  ;;  %v873_v11 = vmul.f32 0.6931472, %v2450_v5 }
 0x132   : > { %2453 = vlog2.f32 %v880_v8  ;;  %v884_v17 = vadd.f32 1.0, %v883_v9  ;;  %vm887_vm8 = vcmp.lt.f32.partialorder %v886_v20, 0.0004427343 }
 0x133   : > { %v722_v3 = vand.u32 2147483647, %v3053_v10  ;;  %589 = vmatmul.f32.gmra.mxu0 %v477_v7  ;;  %v879_v14 = vsel %vm878_vm6, %v876_v12, %v873_v11  ;;  %v626_v8 = vmax.f32 %v3053_v10, 0.0  ;;  %vm658_vm13 = vcmp.ne.f32.partialorder %v3053_v10, %v3053_v10 }
 0x134   : > { %v1135_v16 = vadd.f32 %v879_v14, %v623_v13  ;;  %v885_v27 = vmul.f32 %v2448_v1, %v884_v17  ;;  %v480_v1 = vld [vmem:[%s2975_s21 + $0xc8] sm:$0xff] }
 0x135   : > { %v754_v18 = vsub.f32 0.0, %v722_v3 }
 0x136   : > { %v1167_v19 = vsel %vm655_vm7, %v3030_v15, %v1135_v16 }
 0x137   : > { %v2452_v21 = vpop.eup %2451  ;;  %v792_v22 = vmul.f32 1.442695, %v754_v18  ;;  %v2169_v23 = vadd.f32 -0.6931472, %v1167_v19 }
 0x138   : > { %v2454_v24 = vpop.eup %2453  ;;  %v545_v25 = vpop.f32.mrf.mxu0  ;;  %v889_v28 = vadd.f32 1.0, %v2452_v21  ;;  %v892_v31 = vmul.f32 -0.5, %v2452_v21  ;;  %v895_v39 = vand.u32 2147483647, %v2452_v21 }
 0x139   : > { %2455 = vpow2.f32 %v792_v22  ;;  %v3062_v29 = vadd.f32 %v3014_v47, %v545_v25  ;;  %1273 = vmatmul.f32.gmra.mxu1 %v2169_v23  ;;  %v882_v30 = vmul.f32 0.6931472, %v2454_v24 }
 0x13a   : > { %2457 = vlog2.f32 %v889_v28  ;;  %v893_v37 = vadd.f32 1.0, %v892_v31  ;;  %vm896_vm10 = vcmp.lt.f32.partialorder %v895_v39, 0.0004427343 }
 0x13b   : > { %v723_v15 = vand.u32 2147483647, %v3062_v29  ;;  %592 = vmatmul.f32.gmra.mxu0 %v478_v26  ;;  %v888_v33 = vsel %vm887_vm8, %v885_v27, %v882_v30  ;;  %v627_v27 = vmax.f32 %v3062_v29, 0.0  ;;  %vm659_vm15 = vcmp.ne.f32.partialorder %v3062_v29, %v3062_v29 }
 0x13c   : > { %v1136_v35 = vadd.f32 %v888_v33, %v624_v32  ;;  %v894_v51 = vmul.f32 %v2452_v21, %v893_v37  ;;  %v481_v21 = vld [vmem:[%s2975_s21 + $0xd0] sm:$0xff] }
 0x13d   : > { %v755_v36 = vsub.f32 0.0, %v723_v15 }
 0x13e   : > { %v1168_v38 = vsel %vm656_vm9, %v3035_v34, %v1136_v35 }
 0x13f   : > { %v2456_v40 = vpop.eup %2455  ;;  %v794_v41 = vmul.f32 1.442695, %v755_v36  ;;  %v2170_v42 = vadd.f32 -0.6931472, %v1168_v38 }
 0x140   : > { %v2458_v43 = vpop.eup %2457  ;;  %v548_v44 = vpop.f32.mrf.mxu0  ;;  %v898_v46 = vadd.f32 1.0, %v2456_v40  ;;  %v901_v48 = vmul.f32 -0.5, %v2456_v40  ;;  %v904_v59 = vand.u32 2147483647, %v2456_v40 }
 0x141   : > { %2459 = vpow2.f32 %v794_v41  ;;  %v3071_v49 = vadd.f32 %v3014_v47, %v548_v44  ;;  %1276 = vmatmul.f32.gmra.mxu1 %v2170_v42  ;;  %v891_v50 = vmul.f32 0.6931472, %v2458_v43 }
 0x142   : > { %2461 = vlog2.f32 %v898_v46  ;;  %v902_v56 = vadd.f32 1.0, %v901_v48  ;;  %vm905_vm12 = vcmp.lt.f32.partialorder %v904_v59, 0.0004427343 }
 0x143   : > { %v724_v34 = vand.u32 2147483647, %v3071_v49  ;;  %595 = vmatmul.f32.gmra.mxu0 %v479_v45  ;;  %v897_v53 = vsel %vm896_vm10, %v894_v51, %v891_v50  ;;  %v628_v46 = vmax.f32 %v3071_v49, 0.0  ;;  %vm660_vm1 = vcmp.ne.f32.partialorder %v3071_v49, %v3071_v49 }
 0x144   : > { %v1137_v55 = vadd.f32 %v897_v53, %v625_v52  ;;  %v903_v2 = vmul.f32 %v2456_v40, %v902_v56  ;;  %v482_v40 = vld [vmem:[%s2975_s21 + $0xd8] sm:$0xff] }
 0x145   : > { %v756_v57 = vsub.f32 0.0, %v724_v34 }
 0x146   : > { %v1169_v58 = vsel %vm657_vm11, %v3044_v54, %v1137_v55 }
 0x147   : > { %v2460_v60 = vpop.eup %2459  ;;  %v796_v61 = vmul.f32 1.442695, %v756_v57  ;;  %v2171_v62 = vadd.f32 -0.6931472, %v1169_v58 }
 0x148   : > { %v2462_v63 = vpop.eup %2461  ;;  %v551_v0 = vpop.f32.mrf.mxu0  ;;  %v907_v4 = vadd.f32 1.0, %v2460_v60  ;;  %v910_v7 = vmul.f32 -0.5, %v2460_v60  ;;  %v913_v14 = vand.u32 2147483647, %v2460_v60 }
 0x149   : > { %2463 = vpow2.f32 %v796_v61  ;;  %v3080_v5 = vadd.f32 %v3014_v47, %v551_v0  ;;  %1279 = vmatmul.f32.gmra.mxu1 %v2171_v62  ;;  %v900_v6 = vmul.f32 0.6931472, %v2462_v63 }
 0x14a   : > { %2465 = vlog2.f32 %v907_v4  ;;  %v911_v13 = vadd.f32 1.0, %v910_v7  ;;  %vm914_vm14 = vcmp.lt.f32.partialorder %v913_v14, 0.0004427343 }
 0x14b   : > { %v725_v54 = vand.u32 2147483647, %v3080_v5  ;;  %598 = vmatmul.f32.gmra.mxu0 %v480_v1  ;;  %v906_v9 = vsel %vm905_vm12, %v903_v2, %v900_v6  ;;  %v629_v2 = vmax.f32 %v3080_v5, 0.0  ;;  %vm661_vm3 = vcmp.ne.f32.partialorder %v3080_v5, %v3080_v5 }
 0x14c   : > { %v1138_v11 = vadd.f32 %v906_v9, %v626_v8  ;;  %v912_v26 = vmul.f32 %v2460_v60, %v911_v13  ;;  %v483_v60 = vld [vmem:[%s2975_s21 + $0xe0] sm:$0xff] }
 0x14d   : > { %v757_v12 = vsub.f32 0.0, %v725_v54 }
 0x14e   : > { %v1170_v3 = vsel %vm658_vm13, %v3053_v10, %v1138_v11 }
 0x14f   : > { %v2464_v16 = vpop.eup %2463  ;;  %v798_v17 = vmul.f32 1.442695, %v757_v12  ;;  %v2172_v18 = vadd.f32 -0.6931472, %v1170_v3 }
 0x150   : > { %v2466_v19 = vpop.eup %2465  ;;  %v554_v20 = vpop.f32.mrf.mxu0  ;;  %v916_v22 = vadd.f32 1.0, %v2464_v16  ;;  %v919_v23 = vmul.f32 -0.5, %v2464_v16  ;;  %v922_v33 = vand.u32 2147483647, %v2464_v16 }
 0x151   : > { %2467 = vpow2.f32 %v798_v17  ;;  %v3089_v24 = vadd.f32 %v3014_v47, %v554_v20  ;;  %1282 = vmatmul.f32.gmra.mxu1 %v2172_v18  ;;  %v909_v25 = vmul.f32 0.6931472, %v2466_v19 }
 0x152   : > { %2469 = vlog2.f32 %v916_v22  ;;  %v920_v31 = vadd.f32 1.0, %v919_v23  ;;  %vm923_vm0 = vcmp.lt.f32.partialorder %v922_v33, 0.0004427343 }
 0x153   : > { %v726_v10 = vand.u32 2147483647, %v3089_v24  ;;  %601 = vmatmul.f32.gmra.mxu0 %v481_v21  ;;  %v915_v28 = vsel %vm914_vm14, %v912_v26, %v909_v25  ;;  %v630_v22 = vmax.f32 %v3089_v24, 0.0  ;;  %vm662_vm5 = vcmp.ne.f32.partialorder %v3089_v24, %v3089_v24 }
 0x154   : > { %v1139_v30 = vadd.f32 %v915_v28, %v627_v27  ;;  %v921_v41 = vmul.f32 %v2464_v16, %v920_v31  ;;  %v484_v16 = vld [vmem:[%s2975_s21 + $0xe8] sm:$0xff] }
 0x155   : > { %v758_v32 = vsub.f32 0.0, %v726_v10 }
 0x156   : > { %v1171_v15 = vsel %vm659_vm15, %v3062_v29, %v1139_v30 }
 0x157   : > { %v2468_v35 = vpop.eup %2467  ;;  %v800_v36 = vmul.f32 1.442695, %v758_v32  ;;  %v2173_v37 = vadd.f32 -0.6931472, %v1171_v15 }
 0x158   : > { %v2470_v38 = vpop.eup %2469  ;;  %v557_v39 = vpop.f32.mrf.mxu0  ;;  %v925_v42 = vadd.f32 1.0, %v2468_v35  ;;  %v928_v45 = vmul.f32 -0.5, %v2468_v35  ;;  %v931_v53 = vand.u32 2147483647, %v2468_v35 }
 0x159   : > { %2471 = vpow2.f32 %v800_v36  ;;  %v3098_v43 = vadd.f32 %v3014_v47, %v557_v39  ;;  %1285 = vmatmul.f32.gmra.mxu1 %v2173_v37  ;;  %v918_v44 = vmul.f32 0.6931472, %v2470_v38 }
 0x15a   : > { %2473 = vlog2.f32 %v925_v42  ;;  %v929_v52 = vadd.f32 1.0, %v928_v45  ;;  %vm932_vm2 = vcmp.lt.f32.partialorder %v931_v53, 0.0004427343 }
 0x15b   : > { %v727_v29 = vand.u32 2147483647, %v3098_v43  ;;  %604 = vmatmul.f32.gmra.mxu0 %v482_v40  ;;  %v924_v48 = vsel %vm923_vm0, %v921_v41, %v918_v44  ;;  %v631_v41 = vmax.f32 %v3098_v43, 0.0  ;;  %vm663_vm7 = vcmp.ne.f32.partialorder %v3098_v43, %v3098_v43 }
 0x15c   : > { %v1140_v50 = vadd.f32 %v924_v48, %v628_v46  ;;  %v930_v1 = vmul.f32 %v2468_v35, %v929_v52  ;;  %v485_v35 = vld [vmem:[%s2975_s21 + $0xf0] sm:$0xff] }
 0x15d   : > { %v759_v51 = vsub.f32 0.0, %v727_v29 }
 0x15e   : > { %v1172_v34 = vsel %vm660_vm1, %v3071_v49, %v1140_v50 }
 0x15f   : > { %v2472_v55 = vpop.eup %2471  ;;  %v802_v56 = vmul.f32 1.442695, %v759_v51  ;;  %v2174_v57 = vadd.f32 -0.6931472, %v1172_v34 }
 0x160   : > { %v2474_v58 = vpop.eup %2473  ;;  %v560_v59 = vpop.f32.mrf.mxu0  ;;  %v934_v61 = vadd.f32 1.0, %v2472_v55  ;;  %v937_v62 = vmul.f32 -0.5, %v2472_v55  ;;  %v940_v9 = vand.u32 2147483647, %v2472_v55 }
 0x161   : > { %2475 = vpow2.f32 %v802_v56  ;;  %v3107_v63 = vadd.f32 %v3014_v47, %v560_v59  ;;  %1288 = vmatmul.f32.gmra.mxu1 %v2174_v57  ;;  %v927_v0 = vmul.f32 0.6931472, %v2474_v58 }
 0x162   : > { %2477 = vlog2.f32 %v934_v61  ;;  %v938_v7 = vadd.f32 1.0, %v937_v62  ;;  %vm941_vm4 = vcmp.lt.f32.partialorder %v940_v9, 0.0004427343 }
 0x163   : > { %v728_v49 = vand.u32 2147483647, %v3107_v63  ;;  %607 = vmatmul.f32.gmra.mxu0 %v483_v60  ;;  %v933_v4 = vsel %vm932_vm2, %v930_v1, %v927_v0  ;;  %v632_v61 = vmax.f32 %v3107_v63, 0.0  ;;  %vm664_vm9 = vcmp.ne.f32.partialorder %v3107_v63, %v3107_v63 }
 0x164   : > { %v1141_v6 = vadd.f32 %v933_v4, %v629_v2  ;;  %v939_v17 = vmul.f32 %v2472_v55, %v938_v7  ;;  %v486_v55 = vld [vmem:[%s2975_s21 + $0xf8] sm:$0xff] }
 0x165   : > { %v760_v8 = vsub.f32 0.0, %v728_v49 }
 0x166   : > { %v1173_v54 = vsel %vm661_vm3, %v3080_v5, %v1141_v6 }
 0x167   : > { %v2476_v11 = vpop.eup %2475  ;;  %v804_v12 = vmul.f32 1.442695, %v760_v8  ;;  %v2175_v13 = vadd.f32 -0.6931472, %v1173_v54 }
 0x168   : > { %v2478_v3 = vpop.eup %2477  ;;  %v563_v14 = vpop.f32.mrf.mxu0  ;;  %v943_v18 = vadd.f32 1.0, %v2476_v11  ;;  %v946_v21 = vmul.f32 -0.5, %v2476_v11  ;;  %v949_v28 = vand.u32 2147483647, %v2476_v11 }
 0x169   : > { %2479 = vpow2.f32 %v804_v12  ;;  %v3116_v19 = vadd.f32 %v3014_v47, %v563_v14  ;;  %1291 = vmatmul.f32.gmra.mxu1 %v2175_v13  ;;  %v936_v20 = vmul.f32 0.6931472, %v2478_v3 }
 0x16a   : > { %2481 = vlog2.f32 %v943_v18  ;;  %v947_v27 = vadd.f32 1.0, %v946_v21  ;;  %vm950_vm6 = vcmp.lt.f32.partialorder %v949_v28, 0.0004427343 }
 0x16b   : > { %v729_v5 = vand.u32 2147483647, %v3116_v19  ;;  %610 = vmatmul.f32.gmra.mxu0 %v484_v16  ;;  %v942_v23 = vsel %vm941_vm4, %v939_v17, %v936_v20  ;;  %v633_v16 = vmax.f32 %v3116_v19, 0.0  ;;  %vm665_vm11 = vcmp.ne.f32.partialorder %v3116_v19, %v3116_v19 }
 0x16c   : > { %v1142_v25 = vadd.f32 %v942_v23, %v630_v22  ;;  %v948_v40 = vmul.f32 %v2476_v11, %v947_v27 }
 0x16d   : > { %v761_v26 = vsub.f32 0.0, %v729_v5 }
 0x16e   : > { %v1174_v10 = vsel %vm662_vm5, %v3089_v24, %v1142_v25 }
 0x16f   : > { %v2480_v30 = vpop.eup %2479  ;;  %v806_v31 = vmul.f32 1.442695, %v761_v26  ;;  %v2176_v32 = vadd.f32 -0.6931472, %v1174_v10 }
 0x170   : > { %v2482_v15 = vpop.eup %2481  ;;  %v566_v33 = vpop.f32.mrf.mxu0  ;;  %v952_v36 = vadd.f32 1.0, %v2480_v30  ;;  %v955_v37 = vmul.f32 -0.5, %v2480_v30  ;;  %v958_v48 = vand.u32 2147483647, %v2480_v30 }
 0x171   : > { %2483 = vpow2.f32 %v806_v31  ;;  %v3125_v38 = vadd.f32 %v3014_v47, %v566_v33  ;;  %1294 = vmatmul.f32.gmra.mxu1 %v2176_v32  ;;  %v945_v39 = vmul.f32 0.6931472, %v2482_v15 }
 0x172   : > { %2485 = vlog2.f32 %v952_v36  ;;  %v956_v45 = vadd.f32 1.0, %v955_v37  ;;  %vm959_vm8 = vcmp.lt.f32.partialorder %v958_v48, 0.0004427343 }
 0x173   : > { %v730_v24 = vand.u32 2147483647, %v3125_v38  ;;  %613 = vmatmul.f32.gmra.mxu0 %v485_v35  ;;  %v951_v42 = vsel %vm950_vm6, %v948_v40, %v945_v39  ;;  %v634_v33 = vmax.f32 %v3125_v38, 0.0  ;;  %vm666_vm13 = vcmp.ne.f32.partialorder %v3125_v38, %v3125_v38 }
 0x174   : > { %v1143_v44 = vadd.f32 %v951_v42, %v631_v41  ;;  %v957_v56 = vmul.f32 %v2480_v30, %v956_v45 }
 0x175   : > { %v762_v46 = vsub.f32 0.0, %v730_v24 }
 0x176   : > { %v1175_v29 = vsel %vm663_vm7, %v3098_v43, %v1143_v44 }
 0x177   : > { %v2484_v50 = vpop.eup %2483  ;;  %v808_v51 = vmul.f32 1.442695, %v762_v46  ;;  %v2177_v52 = vadd.f32 -0.6931472, %v1175_v29 }
 0x178   : > { %v2486_v34 = vpop.eup %2485  ;;  %v569_v53 = vpop.f32.mrf.mxu0  ;;  %v961_v57 = vadd.f32 1.0, %v2484_v50  ;;  %v964_v60 = vmul.f32 -0.5, %v2484_v50  ;;  %v967_v4 = vand.u32 2147483647, %v2484_v50 }
 0x179   : > { %2487 = vpow2.f32 %v808_v51  ;;  %v3134_v58 = vadd.f32 %v3014_v47, %v569_v53  ;;  %1297 = vmatmul.f32.gmra.mxu1 %v2177_v52  ;;  %v954_v59 = vmul.f32 0.6931472, %v2486_v34 }
 0x17a   : > { %2489 = vlog2.f32 %v961_v57  ;;  %v965_v2 = vadd.f32 1.0, %v964_v60  ;;  %vm968_vm10 = vcmp.lt.f32.partialorder %v967_v4, 0.0004427343 }
 0x17b   : > { %v731_v43 = vand.u32 2147483647, %v3134_v58  ;;  %616 = vmatmul.f32.gmra.mxu0 %v486_v55  ;;  %v960_v62 = vsel %vm959_vm8, %v957_v56, %v954_v59  ;;  %v635_v34 = vmax.f32 %v3134_v58, 0.0  ;;  %vm667_vm15 = vcmp.ne.f32.partialorder %v3134_v58, %v3134_v58 }
 0x17c   : > { %v1144_v0 = vadd.f32 %v960_v62, %v632_v61  ;;  %v966_v14 = vmul.f32 %v2484_v50, %v965_v2 }
 0x17d   : > { %v763_v1 = vsub.f32 0.0, %v731_v43 }
 0x17e   : > { %v1176_v49 = vsel %vm664_vm9, %v3107_v63, %v1144_v0 }
 0x17f   : > { %v2488_v6 = vpop.eup %2487  ;;  %v810_v7 = vmul.f32 1.442695, %v763_v1  ;;  %v2178_v8 = vadd.f32 -0.6931472, %v1176_v49 }
 0x180   : > { %v2490_v54 = vpop.eup %2489  ;;  %v572_v9 = vpop.f32.mrf.mxu0  ;;  %v970_v11 = vadd.f32 1.0, %v2488_v6  ;;  %v973_v12 = vmul.f32 -0.5, %v2488_v6  ;;  %v976_v5 = vand.u32 2147483647, %v2488_v6 }
 0x181   : > { %2491 = vpow2.f32 %v810_v7  ;;  %v3142_v13 = vadd.f32 %v3014_v47, %v572_v9  ;;  %1300 = vmatmul.f32.gmra.mxu1 %v2178_v8  ;;  %v963_v3 = vmul.f32 0.6931472, %v2490_v54 }
 0x182   : > { %2493 = vlog2.f32 %v970_v11  ;;  %v974_v20 = vadd.f32 1.0, %v973_v12  ;;  %vm977_vm12 = vcmp.lt.f32.partialorder %v976_v5, 0.0004427343 }
 0x183   : > { %v732_v63 = vand.u32 2147483647, %v3142_v13  ;;  %v969_v17 = vsel %vm968_vm10, %v966_v14, %v963_v3  ;;  %v636_v8 = vmax.f32 %v3142_v13, 0.0  ;;  %vm668_vm1 = vcmp.ne.f32.partialorder %v3142_v13, %v3142_v13 }
 0x184   : > { %v1145_v18 = vadd.f32 %v969_v17, %v633_v16  ;;  %v975_v28 = vmul.f32 %v2488_v6, %v974_v20 }
 0x185   : > { %v764_v21 = vsub.f32 0.0, %v732_v63 }
 0x186   : > { %v1177_v22 = vsel %vm665_vm11, %v3116_v19, %v1145_v18 }
 0x187   : > { %v2492_v23 = vpop.eup %2491  ;;  %v812_v25 = vmul.f32 1.442695, %v764_v21  ;;  %v2179_v26 = vadd.f32 -0.6931472, %v1177_v22 }
 0x188   : > { %v2494_v27 = vpop.eup %2493  ;;  %v575_v10 = vpop.f32.mrf.mxu0  ;;  %v979_v30 = vadd.f32 1.0, %v2492_v23  ;;  %v982_v15 = vmul.f32 -0.5, %v2492_v23  ;;  %v985_v41 = vand.u32 2147483647, %v2492_v23 }
 0x189   : > { %2495 = vpow2.f32 %v812_v25  ;;  %v3150_v31 = vadd.f32 %v3014_v47, %v575_v10  ;;  %1303 = vmatmul.f32.gmra.mxu1 %v2179_v26  ;;  %v972_v32 = vmul.f32 0.6931472, %v2494_v27 }
 0x18a   : > { %2497 = vlog2.f32 %v979_v30  ;;  %v983_v39 = vadd.f32 1.0, %v982_v15  ;;  %vm986_vm14 = vcmp.lt.f32.partialorder %v985_v41, 0.0004427343 }
 0x18b   : > { %v733_v19 = vand.u32 2147483647, %v3150_v31  ;;  %v978_v35 = vsel %vm977_vm12, %v975_v28, %v972_v32  ;;  %v637_v27 = vmax.f32 %v3150_v31, 0.0  ;;  %vm669_vm3 = vcmp.ne.f32.partialorder %v3150_v31, %v3150_v31 }
 0x18c   : > { %v1146_v36 = vadd.f32 %v978_v35, %v634_v33  ;;  %v984_v52 = vmul.f32 %v2492_v23, %v983_v39 }
 0x18d   : > { %v765_v37 = vsub.f32 0.0, %v733_v19 }
 0x18e   : > { %v1178_v40 = vsel %vm666_vm13, %v3125_v38, %v1146_v36 }
 0x18f   : > { %v2496_v24 = vpop.eup %2495  ;;  %v814_v42 = vmul.f32 1.442695, %v765_v37  ;;  %v2180_v44 = vadd.f32 -0.6931472, %v1178_v40 }
 0x190   : > { %v2498_v45 = vpop.eup %2497  ;;  %v578_v46 = vpop.f32.mrf.mxu0  ;;  %v988_v29 = vadd.f32 1.0, %v2496_v24  ;;  %v991_v48 = vmul.f32 -0.5, %v2496_v24  ;;  %v994_v60 = vand.u32 2147483647, %v2496_v24 }
 0x191   : > { %2499 = vpow2.f32 %v814_v42  ;;  %v3158_v50 = vadd.f32 %v3014_v47, %v578_v46  ;;  %1306 = vmatmul.f32.gmra.mxu1 %v2180_v44  ;;  %v981_v51 = vmul.f32 0.6931472, %v2498_v45 }
 0x192   : > { %2501 = vlog2.f32 %v988_v29  ;;  %v992_v56 = vadd.f32 1.0, %v991_v48  ;;  %vm995_vm0 = vcmp.lt.f32.partialorder %v994_v60, 0.0004427343 }
 0x193   : > { %v734_v38 = vand.u32 2147483647, %v3158_v50  ;;  %v987_v53 = vsel %vm986_vm14, %v984_v52, %v981_v51  ;;  %v638_v46 = vmax.f32 %v3158_v50, 0.0  ;;  %vm670_vm5 = vcmp.ne.f32.partialorder %v3158_v50, %v3158_v50 }
 0x194   : > { %v1147_v55 = vadd.f32 %v987_v53, %v635_v34  ;;  %v993_v2 = vmul.f32 %v2496_v24, %v992_v56 }
 0x195   : > { %v766_v57 = vsub.f32 0.0, %v734_v38 }
 0x196   : > { %v1179_v59 = vsel %vm667_vm15, %v3134_v58, %v1147_v55 }
 0x197   : > { %v2500_v61 = vpop.eup %2499  ;;  %v816_v43 = vmul.f32 1.442695, %v766_v57  ;;  %v2181_v62 = vadd.f32 -0.6931472, %v1179_v59 }
 0x198   : > { %v2502_v0 = vpop.eup %2501  ;;  %v581_v1 = vpop.f32.mrf.mxu0  ;;  %v997_v49 = vadd.f32 1.0, %v2500_v61  ;;  %v1000_v7 = vmul.f32 -0.5, %v2500_v61  ;;  %v1003_v16 = vand.u32 2147483647, %v2500_v61 }
 0x199   : > { %2503 = vpow2.f32 %v816_v43  ;;  %v3166_v4 = vadd.f32 %v3014_v47, %v581_v1  ;;  %1309 = vmatmul.f32.gmra.mxu1 %v2181_v62  ;;  %v990_v6 = vmul.f32 0.6931472, %v2502_v0 }
 0x19a   : > { %2505 = vlog2.f32 %v997_v49  ;;  %v1001_v12 = vadd.f32 1.0, %v1000_v7  ;;  %vm1004_vm2 = vcmp.lt.f32.partialorder %v1003_v16, 0.0004427343 }
 0x19b   : > { %v735_v58 = vand.u32 2147483647, %v3166_v4  ;;  %v996_v54 = vsel %vm995_vm0, %v993_v2, %v990_v6  ;;  %v639_v2 = vmax.f32 %v3166_v4, 0.0  ;;  %vm671_vm7 = vcmp.ne.f32.partialorder %v3166_v4, %v3166_v4 }
 0x19c   : > { %v1148_v9 = vadd.f32 %v996_v54, %v636_v8  ;;  %v1002_v26 = vmul.f32 %v2500_v61, %v1001_v12 }
 0x19d   : > { %v767_v11 = vsub.f32 0.0, %v735_v58 }
 0x19e   : > { %v3172_v3 = vpop.f32.mrf.mxu1  ;;  %v1180_v14 = vsel %vm668_vm1, %v3142_v13, %v1148_v9 }
 0x19f   : > { %v2504_v63 = vpop.eup %2503  ;;  %v818_v17 = vmul.f32 1.442695, %v767_v11  ;;  %v2182_v18 = vadd.f32 -0.6931472, %v1180_v14 }
 0x1a0   : > { %v2506_v20 = vpop.eup %2505  ;;  %v584_v21 = vpop.f32.mrf.mxu0  ;;  %v1006_v22 = vadd.f32 1.0, %v2504_v63  ;;  %v1009_v5 = vmul.f32 -0.5, %v2504_v63  ;;  %v1012_v19 = vand.u32 2147483647, %v2504_v63 }
 0x1a1   : > { %2507 = vpow2.f32 %v818_v17  ;;  %v3176_v23 = vadd.f32 %v3014_v47, %v584_v21  ;;  %1312 = vmatmul.f32.gmra.mxu1 %v2182_v18  ;;  %v999_v25 = vmul.f32 0.6931472, %v2506_v20  ;;  %v3208_v18 = vld [vmem:[%s3611_s4] ss:$0 sm:$0xff] }
 0x1a2   : > { %2509 = vlog2.f32 %v1006_v22  ;;  %v1010_v30 = vadd.f32 1.0, %v1009_v5  ;;  %vm1013_vm4 = vcmp.lt.f32.partialorder %v1012_v19, 0.0004427343 }
 0x1a3   : > { %v736_v13 = vand.u32 2147483647, %v3176_v23  ;;  %v1005_v10 = vsel %vm1004_vm2, %v1002_v26, %v999_v25  ;;  %v640_v22 = vmax.f32 %v3176_v23, 0.0  ;;  %vm672_vm9 = vcmp.ne.f32.partialorder %v3176_v23, %v3176_v23 }
 0x1a4   : > { %v1149_v28 = vadd.f32 %v1005_v10, %v637_v27  ;;  %v1011_v41 = vmul.f32 %v2504_v63, %v1010_v30 }
 0x1a5   : > { %v768_v32 = vsub.f32 0.0, %v736_v13 }
 0x1a6   : > { %v3182_v15 = vpop.f32.mrf.mxu1  ;;  %v1181_v33 = vsel %vm669_vm3, %v3150_v31, %v1149_v28 }
 0x1a7   : > { %v2508_v35 = vpop.eup %2507  ;;  %v820_v36 = vmul.f32 1.442695, %v768_v32  ;;  %v2183_v37 = vadd.f32 -0.6931472, %v1181_v33 }
 0x1a8   : > { %v2510_v39 = vpop.eup %2509  ;;  %v587_v40 = vpop.f32.mrf.mxu0  ;;  %v1015_v24 = vadd.f32 1.0, %v2508_v35  ;;  %v1018_v45 = vmul.f32 -0.5, %v2508_v35  ;;  %v1021_v53 = vand.u32 2147483647, %v2508_v35 }
 0x1a9   : > { %2511 = vpow2.f32 %v820_v36  ;;  %v3186_v42 = vadd.f32 %v3014_v47, %v587_v40  ;;  %1315 = vmatmul.f32.gmra.mxu1 %v2183_v37  ;;  %v1008_v44 = vmul.f32 0.6931472, %v2510_v39 }
 0x1aa   : > { %2513 = vlog2.f32 %v1015_v24  ;;  %v1019_v52 = vadd.f32 1.0, %v1018_v45  ;;  %vm1022_vm6 = vcmp.lt.f32.partialorder %v1021_v53, 0.0004427343 }
 0x1ab   : > { %v737_v31 = vand.u32 2147483647, %v3186_v42  ;;  %v1014_v29 = vsel %vm1013_vm4, %v1011_v41, %v1008_v44  ;;  %v641_v44 = vmax.f32 %v3186_v42, 0.0  ;;  %vm673_vm11 = vcmp.ne.f32.partialorder %v3186_v42, %v3186_v42 }
 0x1ac   : > { %v1150_v48 = vadd.f32 %v1014_v29, %v638_v46  ;;  %v1020_v1 = vmul.f32 %v2508_v35, %v1019_v52 }
 0x1ad   : > { %v769_v51 = vsub.f32 0.0, %v737_v31 }
 0x1ae   : > { %v3192_v34 = vpop.f32.mrf.mxu1  ;;  %v1182_v38 = vsel %vm670_vm5, %v3158_v50, %v1150_v48 }
 0x1af   : > { %v2512_v55 = vpop.eup %2511  ;;  %v822_v56 = vmul.f32 1.442695, %v769_v51  ;;  %v2184_v57 = vadd.f32 -0.6931472, %v1182_v38 }
 0x1b0   : > { %v2514_v59 = vpop.eup %2513  ;;  %v590_v60 = vpop.f32.mrf.mxu0  ;;  %v1024_v61 = vadd.f32 1.0, %v2512_v55  ;;  %v1027_v43 = vmul.f32 -0.5, %v2512_v55  ;;  %v1030_v54 = vand.u32 2147483647, %v2512_v55 }
 0x1b1   : > { %2515 = vpow2.f32 %v822_v56  ;;  %v3196_v62 = vadd.f32 %v3014_v47, %v590_v60  ;;  %1318 = vmatmul.f32.gmra.mxu1 %v2184_v57  ;;  %v1017_v0 = vmul.f32 0.6931472, %v2514_v59 }
 0x1b2   : > { %2517 = vlog2.f32 %v1024_v61  ;;  %v1028_v7 = vadd.f32 1.0, %v1027_v43  ;;  %vm1031_vm8 = vcmp.lt.f32.partialorder %v1030_v54, 0.0004427343 }
 0x1b3   : > { %v738_v50 = vand.u32 2147483647, %v3196_v62  ;;  %v1023_v49 = vsel %vm1022_vm6, %v1020_v1, %v1017_v0  ;;  %v642_v1 = vmax.f32 %v3196_v62, 0.0  ;;  %vm674_vm13 = vcmp.ne.f32.partialorder %v3196_v62, %v3196_v62 }
 0x1b4   : > { %v1151_v6 = vadd.f32 %v1023_v49, %v639_v2  ;;  %v1029_v63 = vmul.f32 %v2512_v55, %v1028_v7 }
 0x1b5   : > { %v770_v8 = vsub.f32 0.0, %v738_v50 }
 0x1b6   : > { %v3202_v58 = vpop.f32.mrf.mxu1  ;;  %v1183_v47 = vsel %vm671_vm7, %v3166_v4, %v1151_v6 }
 0x1b7   : > { %v2516_v9 = vpop.eup %2515  ;;  %v824_v11 = vmul.f32 1.442695, %v770_v8  ;;  %v2185_v12 = vadd.f32 -0.6931472, %v1183_v47 }
 0x1b8   : > { %v2518_v14 = vpop.eup %2517  ;;  %v593_v16 = vpop.f32.mrf.mxu0  ;;  %v1033_v17 = vadd.f32 1.0, %v2516_v9  ;;  %v1036_v4 = vmul.f32 -0.5, %v2516_v9  ;;  %v1039_v30 = vand.u32 2147483647, %v2516_v9 }
 0x1b9   : > { %2519 = vpow2.f32 %v824_v11  ;;  %v3211_v20 = vadd.f32 %v3208_v18, %v593_v16  ;;  %1321 = vmatmul.f32.gmra.mxu1 %v2185_v12  ;;  %v1026_v21 = vmul.f32 0.6931472, %v2518_v14 }
 0x1ba   : > { %2521 = vlog2.f32 %v1033_v17  ;;  %v1037_v13 = vadd.f32 1.0, %v1036_v4  ;;  %vm1040_vm10 = vcmp.lt.f32.partialorder %v1039_v30, 0.0004427343 }
 0x1bb   : > { %v739_v5 = vand.u32 2147483647, %v3211_v20  ;;  %v1032_v25 = vsel %vm1031_vm8, %v1029_v63, %v1026_v21  ;;  %vm675_vm15 = vcmp.ne.f32.partialorder %v3211_v20, %v3211_v20 }
 0x1bc   : > { %v1152_v26 = vadd.f32 %v1032_v25, %v640_v22  ;;  %v1038_v24 = vmul.f32 %v2516_v9, %v1037_v13  ;;  %v643_v22 = vmax.f32 %v3211_v20, 0.0 }
 0x1bd   : > { %v771_v27 = vsub.f32 0.0, %v739_v5 }
 0x1be   : > { %v3217_v10 = vpop.f32.mrf.mxu1  ;;  %v1184_v28 = vsel %vm672_vm9, %v3176_v23, %v1152_v26 }
 0x1bf   : > { %v2520_v32 = vpop.eup %2519  ;;  %v826_v33 = vmul.f32 1.442695, %v771_v27  ;;  %v2186_v19 = vadd.f32 -0.6931472, %v1184_v28 }
 0x1c0   : > { %v2522_v35 = vpop.eup %2521  ;;  %v596_v36 = vpop.f32.mrf.mxu0  ;;  %v1042_v37 = vadd.f32 1.0, %v2520_v32  ;;  %v1045_v39 = vmul.f32 -0.5, %v2520_v32  ;;  %v1048_v52 = vand.u32 2147483647, %v2520_v32 }
 0x1c1   : > { %2523 = vpow2.f32 %v826_v33  ;;  %v3221_v40 = vadd.f32 %v3208_v18, %v596_v36  ;;  %1324 = vmatmul.f32.gmra.mxu1 %v2186_v19  ;;  %v1035_v41 = vmul.f32 0.6931472, %v2522_v35 }
 0x1c2   : > { %2525 = vlog2.f32 %v1042_v37  ;;  %v1046_v31 = vadd.f32 1.0, %v1045_v39  ;;  %vm1049_vm12 = vcmp.lt.f32.partialorder %v1048_v52, 0.0004427343 }
 0x1c3   : > { %v740_v23 = vand.u32 2147483647, %v3221_v40  ;;  %v1041_v45 = vsel %vm1040_vm10, %v1038_v24, %v1035_v41  ;;  %vm676_vm1 = vcmp.ne.f32.partialorder %v3221_v40, %v3221_v40 }
 0x1c4   : > { %v1153_v46 = vadd.f32 %v1041_v45, %v641_v44  ;;  %v1047_v59 = vmul.f32 %v2520_v32, %v1046_v31 }
 0x1c5   : > { %v772_v29 = vsub.f32 0.0, %v740_v23  ;;  %v644_v23 = vmax.f32 %v3221_v40, 0.0 }
 0x1c6   : > { %v3227_v48 = vpop.f32.mrf.mxu1  ;;  %v1185_v51 = vsel %vm673_vm11, %v3186_v42, %v1153_v46 }
 0x1c7   : > { %v2524_v38 = vpop.eup %2523  ;;  %v828_v53 = vmul.f32 1.442695, %v772_v29  ;;  %v2187_v55 = vadd.f32 -0.6931472, %v1185_v51 }
 0x1c8   : > { %v2526_v56 = vpop.eup %2525  ;;  %v599_v57 = vpop.f32.mrf.mxu0  ;;  %v1051_v60 = vadd.f32 1.0, %v2524_v38  ;;  %v1054_v0 = vmul.f32 -0.5, %v2524_v38  ;;  %v1057_v47 = vand.u32 2147483647, %v2524_v38 }
 0x1c9   : > { %2527 = vpow2.f32 %v828_v53  ;;  %v3231_v61 = vadd.f32 %v3208_v18, %v599_v57  ;;  %1327 = vmatmul.f32.gmra.mxu1 %v2187_v55  ;;  %v1044_v43 = vmul.f32 0.6931472, %v2526_v56 }
 0x1ca   : > { %2529 = vlog2.f32 %v1051_v60  ;;  %v1055_v6 = vadd.f32 1.0, %v1054_v0  ;;  %vm1058_vm14 = vcmp.lt.f32.partialorder %v1057_v47, 0.0004427343 }
 0x1cb   : > { %v741_v42 = vand.u32 2147483647, %v3231_v61  ;;  %v1050_v2 = vsel %vm1049_vm12, %v1047_v59, %v1044_v43  ;;  %vm677_vm3 = vcmp.ne.f32.partialorder %v3231_v61, %v3231_v61 }
 0x1cc   : > { %v1154_v50 = vadd.f32 %v1050_v2, %v642_v1  ;;  %v1056_v4 = vmul.f32 %v2524_v38, %v1055_v6  ;;  %v645_v2 = vmax.f32 %v3231_v61, 0.0 }
 0x1cd   : > { %v773_v49 = vsub.f32 0.0, %v741_v42 }
 0x1ce   : > { %v3237_v7 = vpop.f32.mrf.mxu1  ;;  %v1186_v8 = vsel %vm674_vm13, %v3196_v62, %v1154_v50 }
 0x1cf   : > { %v2528_v54 = vpop.eup %2527  ;;  %v830_v9 = vmul.f32 1.442695, %v773_v49  ;;  %v2188_v11 = vadd.f32 -0.6931472, %v1186_v8 }
 0x1d0   : > { %v2530_v12 = vpop.eup %2529  ;;  %v602_v14 = vpop.f32.mrf.mxu0  ;;  %v1060_v16 = vadd.f32 1.0, %v2528_v54  ;;  %v1063_v63 = vmul.f32 -0.5, %v2528_v54  ;;  %v1066_v30 = vand.u32 2147483647, %v2528_v54 }
 0x1d1   : > { %2531 = vpow2.f32 %v830_v9  ;;  %v3241_v17 = vadd.f32 %v3208_v18, %v602_v14  ;;  %1330 = vmatmul.f32.gmra.mxu1 %v2188_v11  ;;  %v1053_v21 = vmul.f32 0.6931472, %v2530_v12 }
 0x1d2   : > { %2533 = vlog2.f32 %v1060_v16  ;;  %v1064_v26 = vadd.f32 1.0, %v1063_v63  ;;  %vm1067_vm0 = vcmp.lt.f32.partialorder %v1066_v30, 0.0004427343 }
 0x1d3   : > { %v742_v62 = vand.u32 2147483647, %v3241_v17  ;;  %v1059_v5 = vsel %vm1058_vm14, %v1056_v4, %v1053_v21  ;;  %vm678_vm5 = vcmp.ne.f32.partialorder %v3241_v17, %v3241_v17 }
 0x1d4   : > { %v1155_v25 = vadd.f32 %v1059_v5, %v643_v22  ;;  %v1065_v37 = vmul.f32 %v2528_v54, %v1064_v26 }
 0x1d5   : > { %v774_v27 = vsub.f32 0.0, %v742_v62 }
 0x1d6   : > { %v3247_v13 = vpop.f32.mrf.mxu1  ;;  %v1187_v28 = vsel %vm675_vm15, %v3211_v20, %v1155_v25  ;;  %v646_v25 = vmax.f32 %v3241_v17, 0.0 }
 0x1d7   : > { %v2532_v32 = vpop.eup %2531  ;;  %v832_v33 = vmul.f32 1.442695, %v774_v27  ;;  %v2189_v19 = vadd.f32 -0.6931472, %v1187_v28 }
 0x1d8   : > { %v2534_v35 = vpop.eup %2533  ;;  %v605_v36 = vpop.f32.mrf.mxu0  ;;  %v1069_v39 = vadd.f32 1.0, %v2532_v32  ;;  %v1072_v44 = vmul.f32 -0.5, %v2532_v32  ;;  %v1075_v38 = vand.u32 2147483647, %v2532_v32 }
 0x1d9   : > { %2535 = vpow2.f32 %v832_v33  ;;  %v3251_v41 = vadd.f32 %v3208_v18, %v605_v36  ;;  %1333 = vmatmul.f32.gmra.mxu1 %v2189_v19  ;;  %v1062_v24 = vmul.f32 0.6931472, %v2534_v35 }
 0x1da   : > { %2537 = vlog2.f32 %v1069_v39  ;;  %v1073_v29 = vadd.f32 1.0, %v1072_v44  ;;  %vm1076_vm2 = vcmp.lt.f32.partialorder %v1075_v38, 0.0004427343 }
 0x1db   : > { %v743_v20 = vand.u32 2147483647, %v3251_v41  ;;  %v1068_v45 = vsel %vm1067_vm0, %v1065_v37, %v1062_v24  ;;  %vm679_vm7 = vcmp.ne.f32.partialorder %v3251_v41, %v3251_v41 }
 0x1dc   : > { %v1156_v46 = vadd.f32 %v1068_v45, %v644_v23  ;;  %v1074_v42 = vmul.f32 %v2532_v32, %v1073_v29 }
 0x1dd   : > { %v775_v31 = vsub.f32 0.0, %v743_v20 }
 0x1de   : > { %v3257_v51 = vpop.f32.mrf.mxu1  ;;  %v1188_v52 = vsel %vm676_vm1, %v3221_v40, %v1156_v46 }
 0x1df   : > { %v2536_v53 = vpop.eup %2535  ;;  %v834_v55 = vmul.f32 1.442695, %v775_v31  ;;  %v2190_v56 = vadd.f32 -0.6931472, %v1188_v52  ;;  %v647_v31 = vmax.f32 %v3251_v41, 0.0 }
 0x1e0   : > { %v2538_v57 = vpop.eup %2537  ;;  %v608_v59 = vpop.f32.mrf.mxu0  ;;  %v1078_v60 = vadd.f32 1.0, %v2536_v53  ;;  %v1081_v43 = vmul.f32 -0.5, %v2536_v53  ;;  %v1084_v9 = vand.u32 2147483647, %v2536_v53 }
 0x1e1   : > { %2539 = vpow2.f32 %v834_v55  ;;  %v3261_v0 = vadd.f32 %v3208_v18, %v608_v59  ;;  %1336 = vmatmul.f32.gmra.mxu1 %v2190_v56  ;;  %v1071_v1 = vmul.f32 0.6931472, %v2538_v57 }
 0x1e2   : > { %2541 = vlog2.f32 %v1078_v60  ;;  %v1082_v6 = vadd.f32 1.0, %v1081_v43  ;;  %vm1085_vm4 = vcmp.lt.f32.partialorder %v1084_v9, 0.0004427343 }
 0x1e3   : > { %v744_v40 = vand.u32 2147483647, %v3261_v0  ;;  %v1077_v50 = vsel %vm1076_vm2, %v1074_v42, %v1071_v1  ;;  %vm680_vm9 = vcmp.ne.f32.partialorder %v3261_v0, %v3261_v0 }
 0x1e4   : > { %v1157_v49 = vadd.f32 %v1077_v50, %v645_v2  ;;  %v1083_v21 = vmul.f32 %v2536_v53, %v1082_v6 }
 0x1e5   : > { %v776_v8 = vsub.f32 0.0, %v744_v40 }
 0x1e6   : > { %v3267_v47 = vpop.f32.mrf.mxu1  ;;  %v1189_v54 = vsel %vm677_vm3, %v3231_v61, %v1157_v49 }
 0x1e7   : > { %v2540_v11 = vpop.eup %2539  ;;  %v836_v12 = vmul.f32 1.442695, %v776_v8  ;;  %v2191_v14 = vadd.f32 -0.6931472, %v1189_v54  ;;  %v648_v8 = vmax.f32 %v3261_v0, 0.0 }
 0x1e8   : > { %v2542_v16 = vpop.eup %2541  ;;  %v611_v63 = vpop.f32.mrf.mxu0  ;;  %v1087_v4 = vadd.f32 1.0, %v2540_v11  ;;  %v1090_v5 = vmul.f32 -0.5, %v2540_v11  ;;  %v1093_v19 = vand.u32 2147483647, %v2540_v11 }
 0x1e9   : > { %2543 = vpow2.f32 %v836_v12  ;;  %v3271_v22 = vadd.f32 %v3208_v18, %v611_v63  ;;  %1339 = vmatmul.f32.gmra.mxu1 %v2191_v14  ;;  %v1080_v62 = vmul.f32 0.6931472, %v2542_v16 }
 0x1ea   : > { %2545 = vlog2.f32 %v1087_v4  ;;  %v1091_v30 = vadd.f32 1.0, %v1090_v5  ;;  %vm1094_vm6 = vcmp.lt.f32.partialorder %v1093_v19, 0.0004427343 }
 0x1eb   : > { %v745_v61 = vand.u32 2147483647, %v3271_v22  ;;  %v1086_v26 = vsel %vm1085_vm4, %v1083_v21, %v1080_v62  ;;  %vm681_vm11 = vcmp.ne.f32.partialorder %v3271_v22, %v3271_v22 }
 0x1ec   : > { %v1158_v27 = vadd.f32 %v1086_v26, %v646_v25  ;;  %v1092_v46 = vmul.f32 %v2540_v11, %v1091_v30 }
 0x1ed   : > { %v777_v28 = vsub.f32 0.0, %v745_v61 }
 0x1ee   : > { %v3277_v32 = vpop.f32.mrf.mxu1  ;;  %v1190_v33 = vsel %vm678_vm5, %v3241_v17, %v1158_v27  ;;  %v649_v27 = vmax.f32 %v3271_v22, 0.0 }
 0x1ef   : > { %v2544_v35 = vpop.eup %2543  ;;  %v838_v36 = vmul.f32 1.442695, %v777_v28  ;;  %v2192_v37 = vadd.f32 -0.6931472, %v1190_v33 }
 0x1f0   : > { %v2546_v39 = vpop.eup %2545  ;;  %v614_v24 = vpop.f32.mrf.mxu0  ;;  %v1096_v44 = vadd.f32 1.0, %v2544_v35  ;;  %v1099_v23 = vmul.f32 -0.5, %v2544_v35  ;;  %v1102_v57 = vand.u32 2147483647, %v2544_v35 }
 0x1f1   : > { %2547 = vpow2.f32 %v838_v36  ;;  %v3281_v20 = vadd.f32 %v3208_v18, %v614_v24  ;;  %1342 = vmatmul.f32.gmra.mxu1 %v2192_v37  ;;  %v1089_v45 = vmul.f32 0.6931472, %v2546_v39 }
 0x1f2   : > { %2549 = vlog2.f32 %v1096_v44  ;;  %v1100_v38 = vadd.f32 1.0, %v1099_v23  ;;  %vm1103_vm8 = vcmp.lt.f32.partialorder %v1102_v57, 0.0004427343 }
 0x1f3   : > { %v746_v17 = vand.u32 2147483647, %v3281_v20  ;;  %v1095_v29 = vsel %vm1094_vm6, %v1092_v46, %v1089_v45  ;;  %v650_v46 = vmax.f32 %v3281_v20, 0.0  ;;  %vm682_vm13 = vcmp.ne.f32.partialorder %v3281_v20, %v3281_v20 }
 0x1f4   : > { %v1159_v52 = vadd.f32 %v1095_v29, %v647_v31  ;;  %v1101_v2 = vmul.f32 %v2544_v35, %v1100_v38 }
 0x1f5   : > { %v778_v53 = vsub.f32 0.0, %v746_v17 }
 0x1f6   : > { %v3287_v55 = vpop.f32.mrf.mxu1  ;;  %v1191_v56 = vsel %vm679_vm7, %v3251_v41, %v1159_v52 }
 0x1f7   : > { %v2548_v59 = vpop.eup %2547  ;;  %v840_v60 = vmul.f32 1.442695, %v778_v53  ;;  %v2193_v43 = vadd.f32 -0.6931472, %v1191_v56 }
 0x1f8   : > { %v2550_v1 = vpop.eup %2549  ;;  %v617_v42 = vpop.f32.mrf.mxu0  ;;  %v1105_v40 = vadd.f32 1.0, %v2548_v59  ;;  %v1108_v6 = vmul.f32 -0.5, %v2548_v59  ;;  %v1111_v16 = vand.u32 2147483647, %v2548_v59 }
 0x1f9   : > { %2551 = vpow2.f32 %v840_v60  ;;  %v3291_v50 = vadd.f32 %v3208_v18, %v617_v42  ;;  %1345 = vmatmul.f32.gmra.mxu1 %v2193_v43  ;;  %v1098_v49 = vmul.f32 0.6931472, %v2550_v1  ;;  %v3312_v42 = vld [vmem:[%s3638_s17] ss:$0 sm:$0xff] }
 0x1fa   : > { %2553 = vlog2.f32 %v1105_v40  ;;  %v1109_v12 = vadd.f32 1.0, %v1108_v6  ;;  %vm1112_vm10 = vcmp.lt.f32.partialorder %v1111_v16, 0.0004427343  ;;  %v1376_v40 = vld [vmem:[%s2988_s11 + $0x78] sm:$0xff]  ;;  %v1299_v16 = vadd.f32 %v3312_v42, %v3287_v55  ;;  %v1370_v55 = vld [vmem:[%s2988_s11 + $0x48] sm:$0xff] }
 0x1fb   : > { %v747_v41 = vand.u32 2147483647, %v3291_v50  ;;  %v1104_v54 = vsel %vm1103_vm8, %v1101_v2, %v1098_v49  ;;  %v651_v60 = vmax.f32 %v3291_v50, 0.0  ;;  %vm683_vm15 = vcmp.ne.f32.partialorder %v3291_v50, %v3291_v50 }
 0x1fc   : > { %v1160_v9 = vadd.f32 %v1104_v54, %v648_v8  ;;  %v1110_v61 = vmul.f32 %v2548_v59, %v1109_v12 }
 0x1fd   : > { %v779_v11 = vsub.f32 0.0, %v747_v41  ;;  %v1375_v41 = vld [vmem:[%s2988_s11 + $0x70] sm:$0xff] }
 0x1fe   : > { %v3297_v14 = vpop.f32.mrf.mxu1  ;;  %v1192_v18 = vsel %vm680_vm9, %v3261_v0, %v1160_v9 }
 0x1ff   : > { %v2552_v63 = vpop.eup %2551  ;;  %v842_v21 = vmul.f32 1.442695, %v779_v11  ;;  %v2194_v4 = vadd.f32 -0.6931472, %v1192_v18  ;;  %v1374_v11 = vld [vmem:[%s2988_s11 + $0x68] sm:$0xff]  ;;  %v1302_v12 = vadd.f32 %v3312_v42, %v3297_v14  ;;  %v1373_v18 = vld [vmem:[%s2988_s11 + $0x60] sm:$0xff] }
 0x200   : > { %v2554_v62 = vpop.eup %2553  ;;  %v1114_v5 = vadd.f32 1.0, %v2552_v63  ;;  %v1117_v26 = vmul.f32 -0.5, %v2552_v63  ;;  %v1120_v35 = vand.u32 2147483647, %v2552_v63  ;;  %v1371_v14 = vld [vmem:[%s2988_s11 + $0x50] sm:$0xff] }
 0x201   : > { %2555 = vpow2.f32 %v842_v21  ;;  %1348 = vmatmul.f32.gmra.mxu1 %v2194_v4  ;;  %v1107_v25 = vmul.f32 0.6931472, %v2554_v62  ;;  %v1372_v4 = vld [vmem:[%s2988_s11 + $0x58] sm:$0xff]  ;;  %v1296_v62 = vadd.f32 %v3312_v42, %v3277_v32  ;;  %v1287_v32 = vadd.f32 %v3312_v42, %v3247_v13  ;;  %v1366_v13 = vld [vmem:[%s2988_s11 + $0x28] sm:$0xff] }
 0x202   : > { %2557 = vlog2.f32 %v1114_v5  ;;  %v1118_v0 = vadd.f32 1.0, %v1117_v26  ;;  %vm1121_vm12 = vcmp.lt.f32.partialorder %v1120_v35, 0.0004427343  ;;  %v1405_v5 = vmul.f32 %v1373_v18, %v1302_v12 }
 0x203   : > { %v1113_v28 = vsel %vm1112_vm10, %v1110_v61, %v1107_v25  ;;  %v1293_v25 = vadd.f32 %v3312_v42, %v3267_v47  ;;  %v1404_v61 = vmul.f32 %v1372_v4, %v1299_v16  ;;  %v1290_v26 = vadd.f32 %v3312_v42, %v3257_v51  ;;  %v1368_v47 = vld [vmem:[%s2988_s11 + $0x38] sm:$0xff]  ;;  %v1367_v51 = vld [vmem:[%s2988_s11 + $0x30] sm:$0xff] }
 0x204   : > { %v1161_v30 = vadd.f32 %v1113_v28, %v649_v27  ;;  %v1119_v23 = vmul.f32 %v2552_v63, %v1118_v0  ;;  %v1403_v27 = vmul.f32 %v1371_v14, %v1296_v62  ;;  %v1369_v28 = vld [vmem:[%s2988_s11 + $0x40] sm:$0xff]  ;;  %v1281_v35 = vadd.f32 %v3312_v42, %v3227_v48  ;;  %v1364_v48 = vld [vmem:[%s2988_s11 + $0x18] sm:$0xff] }
 0x205   : > { %v2809_v4 = vmov 1.0  }
 0x206   : > { %v1304_v33 = vpop.f32.mrf.mxu1  ;;  %v1193_v19 = vsel %vm681_vm11, %v3271_v22, %v1161_v30  ;;  %v1402_v30 = vmul.f32 %v1370_v55, %v1293_v25  ;;  %v1389_v25 = vld [vmem:[%s2988_s11 + $0xe0] sm:$0xff] }
 0x207   : > { %v2556_v36 = vpop.eup %2555  ;;  %v2195_v37 = vadd.f32 -0.6931472, %v1193_v19  ;;  %v1305_v54 = vadd.f32 %v3312_v42, %v1304_v33  ;;  %v1284_v33 = vadd.f32 %v3312_v42, %v3237_v7  ;;  %v1401_v19 = vmul.f32 %v1369_v28, %v1290_v26  ;;  %v1388_v26 = vld [vmem:[%s2988_s11 + $0xd8] sm:$0xff] }
 0x208   : > { %v2558_v39 = vpop.eup %2557  ;;  %v1123_v24 = vadd.f32 1.0, %v2556_v36  ;;  %v1126_v45 = vmul.f32 -0.5, %v2556_v36  ;;  %v1129_v38 = vand.u32 2147483647, %v2556_v36  ;;  %v1275_v7 = vadd.f32 %v3312_v42, %v3202_v58 }
 0x209   : > { %1351 = vmatmul.f32.gmra.mxu1 %v2195_v37  ;;  %v1116_v44 = vmul.f32 0.6931472, %v2558_v39  ;;  %v1406_v63 = vmul.f32 %v1374_v11, %v1305_v54  ;;  %v1278_v37 = vadd.f32 %v3312_v42, %v3217_v10  ;;  %v1399_v39 = vmul.f32 %v1367_v51, %v1284_v33  ;;  %v1386_v33 = vld [vmem:[%s2988_s11 + $0xc8] sm:$0xff] }
 0x20a   : > { %2559 = vlog2.f32 %v1123_v24  ;;  %v1127_v29 = vadd.f32 1.0, %v1126_v45  ;;  %vm1130_vm14 = vcmp.lt.f32.partialorder %v1129_v38, 0.0004427343  ;;  %v1365_v24 = vld [vmem:[%s2988_s11 + $0x20] sm:$0xff]  ;;  %v1272_v45 = vadd.f32 %v3312_v42, %v3192_v34 }
 0x20b   : > { %v1122_v31 = vsel %vm1121_vm12, %v1119_v23, %v1116_v44  ;;  %v1398_v44 = vmul.f32 %v1366_v13, %v1281_v35  ;;  %v1269_v10 = vadd.f32 %v3312_v42, %v3182_v15  ;;  %v1266_v58 = vadd.f32 %v3312_v42, %v3172_v3 }
 0x20c   : > { %v1162_v17 = vadd.f32 %v1122_v31, %v650_v46  ;;  %v1128_v59 = vmul.f32 %v2556_v36, %v1127_v29  ;;  %v1400_v36 = vmul.f32 %v1368_v47, %v1287_v32  ;;  %v1397_v46 = vmul.f32 %v1365_v24, %v1278_v37  ;;  %v1363_v31 = vld [vmem:[%s2988_s11 + $0x10] sm:$0xff]  ;;  %v1362_v29 = vld [vmem:[%s2988_s11 + $0x8] sm:$0xff] }
 0x20d   : > { %v1394_v38 = vmul.f32 %v1362_v29, %v1269_v10  ;;  %v1387_v32 = vld [vmem:[%s2988_s11 + $0xd0] sm:$0xff]  ;;  %v1381_v29 = vld [vmem:[%s2988_s11 + $0xa0] sm:$0xff] }
 0x20e   : > { %v1307_v22 = vpop.f32.mrf.mxu1  ;;  %v1194_v52 = vsel %vm682_vm13, %v3281_v20, %v1162_v17  ;;  %v1396_v17 = vmul.f32 %v1364_v48, %v1275_v7 }
 0x20f   : > { %v2196_v53 = vadd.f32 -0.6931472, %v1194_v52  ;;  %v1308_v49 = vadd.f32 %v3312_v42, %v1307_v22  ;;  %v1395_v22 = vmul.f32 %v1363_v31, %v1272_v45  ;;  %v1361_v52 = vld [vmem:[%s2988_s11] sm:$0xff] }
 0x210   : > { %v2560_v56 = vpop.eup %2559  ;;  %v1393_v34 = vmul.f32 %v1361_v52, %v1266_v58  ;;  %v1380_v52 = vld [vmem:[%s2988_s11 + $0x98] sm:$0xff] }
 0x211   : > { %1354 = vmatmul.f32.gmra.mxu1 %v2196_v53  ;;  %v1125_v57 = vmul.f32 0.6931472, %v2560_v56 }
 0x213   : > { %v1131_v43 = vsel %vm1130_vm14, %v1128_v59, %v1125_v57 }
 0x214   : > { %v1163_v1 = vadd.f32 %v1131_v43, %v651_v60 }
 0x216   : > { %v1310_v20 = vpop.f32.mrf.mxu1  ;;  %v1195_v2 = vsel %vm683_vm15, %v3291_v50, %v1163_v1  ;;  %v1407_v50 = vmul.f32 %v1375_v41, %v1308_v49  ;;  %v1426_v49 = vlaneseq  ;;  %v3374_v41 = vld [vmem:[%s2982_s7] sm:$0x3] }
 0x217   : > { %v1311_v6 = vadd.f32 %v3312_v42, %v1310_v20  ;;  %v2197_v8 = vadd.f32 -0.6931472, %v1195_v2  ;;  %v3381_v12 = vperm.slane %v3374_v41, 0 }
 0x218   : > { %v3378_v11 = vshrl.u32 %v1426_v49, 7 }
 0x219   : > { %1357 = vmatmul.f32.gmra.mxu1 %v2197_v8  ;;  %v1408_v9 = vmul.f32 %v1376_v40, %v1311_v6  ;;  %v1392_v8 = vld [vmem:[%s2988_s11 + $0xf8] sm:$0xff] }
 0x21a   : > { %vm1495_vm0 = vcmp.eq.s32.totalorder %v3381_v12, %v3378_v11  ;;  %v3391_v14 = vadd.s32 8, %v3378_v11  ;;  %v1429_v35 = vadd.s32 16, %v3378_v11  ;;  %v1437_v49 = vadd.s32 80, %v3378_v11 }
 0x21b   : > { %1719 = vmatpush.msra.mxu2 %v1408_v9 }
 0x21c   : > { %vm1497_vm1 = vcmp.eq.s32.totalorder %v3381_v12, %v3391_v14  ;;  %vm1499_vm2 = vcmp.eq.s32.totalorder %v3381_v12, %v1429_v35 }
 0x21d   : > { %1720 = vmatpush.msra.mxu2 %v1407_v50  ;;  %v1391_v50 = vld [vmem:[%s2988_s11 + $0xf0] sm:$0xff] }
 0x21e   : > { %v3328_v21 = vpop.f32.mrf.mxu1 }
 0x21f   : > { %1721 = vmatpush.msra.mxu2 %v1406_v63  ;;  %v1390_v63 = vld [vmem:[%s2988_s11 + $0xe8] sm:$0xff] }
 0x221   : > { %1722 = vmatpush.msra.mxu2 %v1405_v5 }
 0x223   : > { %1723 = vmatpush.msra.mxu2 %v1404_v61 }
 0x225   : > { %1724 = vmatpush.msra.mxu2 %v1403_v27 }
 0x226   : > { %v3342_v0 = vpop.f32.mrf.mxu1 }
 0x227   : > { %1725 = vmatpush.msra.mxu2 %v1402_v30 }
 0x229   : > { %1726 = vmatpush.msra.mxu2 %v1401_v19 }
 0x22b   : > { %1727 = vmatpush.msra.mxu2 %v1400_v36  ;;  %v1385_v36 = vld [vmem:[%s2988_s11 + $0xc0] sm:$0xff] }
 0x22d   : > { %1728 = vmatpush.msra.mxu2 %v1399_v39  ;;  %v1384_v39 = vld [vmem:[%s2988_s11 + $0xb8] sm:$0xff] }
 0x22e   : > { %v3356_v23 = vpop.f32.mrf.mxu1 }
 0x22f   : > { %1729 = vmatpush.msra.mxu2 %v1398_v44  ;;  %v1383_v44 = vld [vmem:[%s2988_s11 + $0xb0] sm:$0xff] }
 0x231   : > { %1730 = vmatpush.msra.mxu2 %v1397_v46  ;;  %v1382_v46 = vld [vmem:[%s2988_s11 + $0xa8] sm:$0xff] }
 0x233   : > { %1731 = vmatpush.msra.mxu2 %v1396_v17  ;;  %v1430_v17 = vadd.s32 24, %v3378_v11 }
 0x235   : > { %1732 = vmatpush.msra.mxu2 %v1395_v22  ;;  %vm1501_vm3 = vcmp.eq.s32.totalorder %v3381_v12, %v1430_v17 }
 0x236   : > { %v3368_v53 = vpop.f32.mrf.mxu1 }
 0x237   : > { %1733 = vmatpush.msra.mxu2 %v1394_v38  ;;  %v1323_v58 = vadd.f32 %v3312_v42, %v3368_v53  ;;  %v1320_v38 = vadd.f32 %v3312_v42, %v3356_v23  ;;  %v1314_v53 = vadd.f32 %v3312_v42, %v3328_v21  ;;  %v3432_v23 = vperm.slane %v3374_v41, 1 }
 0x238   : > { %v1433_v21 = vadd.s32 48, %v3378_v11  ;;  %v1440_v41 = vadd.s32 104, %v3378_v11 }
 0x239   : > { %1734 = vmatpush.msra.mxu2 %v1393_v34  ;;  %vm1496_vm4 = vcmp.eq.s32.totalorder %v3432_v23, %v3378_v11  ;;  %vm1498_vm6 = vcmp.eq.s32.totalorder %v3432_v23, %v3391_v14  ;;  %vm1500_vm8 = vcmp.eq.s32.totalorder %v3432_v23, %v1429_v35  ;;  %vm1502_vm10 = vcmp.eq.s32.totalorder %v3432_v23, %v1430_v17 }
 0x23a   : > { %2262 = vmatmul.msk.f32.vlgmr.msra.gmra.mxu2 %vm1495_vm0, %v2809_v4  ;;  %vm1507_vm9 = vcmp.eq.s32.totalorder %v3381_v12, %v1433_v21  ;;  %vm1508_vm0 = vcmp.eq.s32.totalorder %v3432_v23, %v1433_v21  ;;  %v1446_v14 = vadd.s32 152, %v3378_v11  ;;  %v1449_v35 = vadd.s32 176, %v3378_v11 }
 0x23e   : > { %v3370_v56 = vpop.f32.mrf.mxu1 }
 0x23f   : > { %v1326_v31 = vadd.f32 %v3312_v42, %v3370_v56  ;;  %v1379_v56 = vld [vmem:[%s2988_s11 + $0x90] sm:$0xff] }
 0x241   : > { %v1413_v34 = vmul.f32 %v1381_v29, %v1326_v31  ;;  %v1691_v29 = vld [vmem:[#allocation11 + $0x20] sm:$0xff] }
 0x242   : > { %2263 = vmatmul.msk.f32.gmra.mxu2 %vm1497_vm1, %v2809_v4  ;;  %vm1515_vm1 = vcmp.eq.s32.totalorder %v3381_v12, %v1437_v49 }
 0x246   : > { %v1328_v15 = vpop.f32.mrf.mxu1 }
 0x247   : > { %v1329_v48 = vadd.f32 %v3312_v42, %v1328_v15  ;;  %v1317_v15 = vadd.f32 %v3312_v42, %v3342_v0 }
 0x249   : > { %v1414_v22 = vmul.f32 %v1382_v46, %v1329_v48  ;;  %v1690_v48 = vld [vmem:[#allocation11 + $0x18] sm:$0xff] }
 0x24a   : > { %2264 = vmatmul.msk.f32.gmra.mxu2 %vm1499_vm2, %v2809_v4 }
 0x24e   : > { %v1331_v57 = vpop.f32.mrf.mxu1 }
 0x24f   : > { %v1332_v24 = vadd.f32 %v3312_v42, %v1331_v57  ;;  %v1412_v57 = vmul.f32 %v1380_v52, %v1323_v58 }
 0x251   : > { %v1415_v10 = vmul.f32 %v1383_v44, %v1332_v24 }
 0x252   : > { %2265 = vmatmul.msk.f32.gmra.mxu2 %vm1501_vm3, %v2809_v4 }
 0x256   : > { %v1334_v59 = vpop.f32.mrf.mxu1 }
 0x257   : > { %v1335_v13 = vadd.f32 %v3312_v42, %v1334_v59  ;;  %v1378_v59 = vld [vmem:[%s2988_s11 + $0x88] sm:$0xff] }
 0x259   : > { %v1416_v45 = vmul.f32 %v1384_v39, %v1335_v13  ;;  %v1689_v13 = vld [vmem:[#allocation11 + $0x10] sm:$0xff] }
 0x25e   : > { %v1337_v60 = vpop.f32.mrf.mxu1 }
 0x25f   : > { %v1338_v19 = vadd.f32 %v3312_v42, %v1337_v60  ;;  %v1411_v60 = vmul.f32 %v1379_v56, %v1320_v38  ;;  %v1452_v38 = vadd.s32 200, %v3378_v11  ;;  %v1692_v56 = vld [vmem:[#allocation11 + $0x28] sm:$0xff] }
 0x261   : > { %v1417_v7 = vmul.f32 %v1385_v36, %v1338_v19 }
 0x266   : > { %v1340_v3 = vpop.f32.mrf.mxu1 }
 0x267   : > { %v1341_v30 = vadd.f32 %v3312_v42, %v1340_v3  ;;  %v1431_v3 = vadd.s32 32, %v3378_v11 }
 0x269   : > { %v1418_v37 = vmul.f32 %v1386_v33, %v1341_v30  ;;  %vm1503_vm5 = vcmp.eq.s32.totalorder %v3381_v12, %v1431_v3  ;;  %vm1504_vm12 = vcmp.eq.s32.totalorder %v3432_v23, %v1431_v3  ;;  %v1693_v3 = vld [vmem:[#allocation11 + $0x30] sm:$0xff] }
 0x26a   : > { %2266 = vmatmul.msk.f32.gmra.mxu2 %vm1503_vm5, %v2809_v4 }
 0x26e   : > { %v1343_v43 = vpop.f32.mrf.mxu1 }
 0x26f   : > { %v1344_v27 = vadd.f32 %v3312_v42, %v1343_v43  ;;  %v1377_v43 = vld [vmem:[%s2988_s11 + $0x80] sm:$0xff] }
 0x270   : > { %v1409_v0 = vmul.f32 %v1377_v43, %v1314_v53  ;;  %v1453_v53 = vadd.s32 208, %v3378_v11 }
 0x271   : > { %v1419_v51 = vmul.f32 %v1387_v32, %v1344_v27  ;;  %v1448_v32 = vadd.s32 168, %v3378_v11 }
 0x276   : > { %v1346_v1 = vpop.f32.mrf.mxu1 }
 0x277   : > { %v1347_v61 = vadd.f32 %v3312_v42, %v1346_v1  ;;  %v1410_v1 = vmul.f32 %v1378_v59, %v1317_v15 }
 0x279   : > { %v1420_v47 = vmul.f32 %v1388_v26, %v1347_v61  ;;  %v1447_v61 = vadd.s32 160, %v3378_v11 }
 0x27e   : > { %v1349_v20 = vpop.f32.mrf.mxu1 }
 0x27f   : > { %v1350_v62 = vadd.f32 %v3312_v42, %v1349_v20  ;;  %v1434_v20 = vadd.s32 56, %v3378_v11 }
 0x281   : > { %v1421_v28 = vmul.f32 %v1389_v25, %v1350_v62  ;;  %vm1509_vm11 = vcmp.eq.s32.totalorder %v3381_v12, %v1434_v20  ;;  %vm1510_vm2 = vcmp.eq.s32.totalorder %v3432_v23, %v1434_v20  ;;  %v1445_v62 = vadd.s32 144, %v3378_v11  ;;  %v1694_v20 = vld [vmem:[#allocation11 + $0x38] sm:$0xff] }
 0x286   : > { %v1352_v2 = vpop.f32.mrf.mxu1 }
 0x287   : > { %v1353_v18 = vadd.f32 %v3312_v42, %v1352_v2  ;;  %v1435_v2 = vadd.s32 64, %v3378_v11 }
 0x289   : > { %v1422_v55 = vmul.f32 %v1390_v63, %v1353_v18  ;;  %vm1511_vm13 = vcmp.eq.s32.totalorder %v3381_v12, %v1435_v2 }
 0x28e   : > { %v1355_v40 = vpop.f32.mrf.mxu1 }
 0x28f   : > { %v1356_v54 = vadd.f32 %v3312_v42, %v1355_v40  ;;  %v1436_v40 = vadd.s32 72, %v3378_v11 }
 0x291   : > { %v1423_v5 = vmul.f32 %v1391_v50, %v1356_v54  ;;  %vm1513_vm15 = vcmp.eq.s32.totalorder %v3381_v12, %v1436_v40  ;;  %v1441_v54 = vadd.s32 112, %v3378_v11  ;;  %v1443_v50 = vadd.s32 128, %v3378_v11 }
 0x296   : > { %v1358_v6 = vpop.f32.mrf.mxu1 }
 0x297   : > { %v1359_v9 = vadd.f32 %v3312_v42, %v1358_v6  ;;  %v1432_v42 = vadd.s32 40, %v3378_v11  ;;  %v1438_v6 = vadd.s32 88, %v3378_v11 }
 0x299   : > { %v1424_v16 = vmul.f32 %v1392_v8, %v1359_v9  ;;  %vm1505_vm7 = vcmp.eq.s32.totalorder %v3381_v12, %v1432_v42  ;;  %vm1506_vm14 = vcmp.eq.s32.totalorder %v3432_v23, %v1432_v42  ;;  %vm1517_vm3 = vcmp.eq.s32.totalorder %v3381_v12, %v1438_v6 }
 0x29a   : > { %2267 = vmatmul.msk.f32.gmra.mxu2 %vm1505_vm7, %v2809_v4  ;;  %v1439_v8 = vadd.s32 96, %v3378_v11  ;;  %vm1521_vm7 = vcmp.eq.s32.totalorder %v3381_v12, %v1440_v41  ;;  %v1442_v9 = vadd.s32 120, %v3378_v11  ;;  %v1454_v42 = vadd.s32 216, %v3378_v11 }
 0x29b   : > { %1832 = vmatpush.msra.mxu3 %v1424_v16  ;;  %v1444_v16 = vadd.s32 136, %v3378_v11 }
 0x29c   : > { %vm1519_vm5 = vcmp.eq.s32.totalorder %v3381_v12, %v1439_v8 }
 0x29d   : > { %1833 = vmatpush.msra.mxu3 %v1423_v5 }
 0x29f   : > { %1834 = vmatpush.msra.mxu3 %v1422_v55  ;;  %v1687_v55 = vld [vmem:[#allocation11] sm:$0xff] }
 0x2a1   : > { %1835 = vmatpush.msra.mxu3 %v1421_v28 }
 0x2a2   : > { %2268 = vmatmul.msk.f32.gmra.mxu2 %vm1507_vm9, %v2809_v4  ;;  %vm1523_vm9 = vcmp.eq.s32.totalorder %v3381_v12, %v1441_v54 }
 0x2a3   : > { %1836 = vmatpush.msra.mxu3 %v1420_v47  ;;  %v1688_v47 = vld [vmem:[#allocation11 + $0x8] sm:$0xff] }
 0x2a5   : > { %1837 = vmatpush.msra.mxu3 %v1419_v51 }
 0x2a7   : > { %1838 = vmatpush.msra.mxu3 %v1418_v37 }
 0x2a9   : > { %1839 = vmatpush.msra.mxu3 %v1417_v7  ;;  %v1450_v7 = vadd.s32 184, %v3378_v11 }
 0x2aa   : > { %2269 = vmatmul.msk.f32.gmra.mxu2 %vm1509_vm11, %v2809_v4  ;;  %vm1525_vm11 = vcmp.eq.s32.totalorder %v3381_v12, %v1442_v9 }
 0x2ab   : > { %1840 = vmatpush.msra.mxu3 %v1416_v45 }
 0x2ad   : > { %1841 = vmatpush.msra.mxu3 %v1415_v10  ;;  %v1451_v10 = vadd.s32 192, %v3378_v11 }
 0x2af   : > { %1842 = vmatpush.msra.mxu3 %v1414_v22 }
 0x2b1   : > { %1843 = vmatpush.msra.mxu3 %v1413_v34 }
 0x2b2   : > { %2270 = vmatmul.msk.f32.gmra.mxu2 %vm1511_vm13, %v2809_v4  ;;  %vm1527_vm13 = vcmp.eq.s32.totalorder %v3381_v12, %v1443_v50 }
 0x2b3   : > { %1844 = vmatpush.msra.mxu3 %v1412_v57 }
 0x2b5   : > { %1845 = vmatpush.msra.mxu3 %v1411_v60 }
 0x2b7   : > { %1846 = vmatpush.msra.mxu3 %v1410_v1 }
 0x2b9   : > { %1847 = vmatpush.msra.mxu3 %v1409_v0 }
 0x2ba   : > { %2294 = vmatmul.msk.f32.vlgmr.msra.gmra.mxu3 %vm1496_vm4, %v2809_v4  ;;  %2271 = vmatmul.msk.f32.gmra.mxu2 %vm1513_vm15, %v2809_v4  ;;  %vm1512_vm4 = vcmp.eq.s32.totalorder %v3432_v23, %v1435_v2  ;;  %vm1529_vm15 = vcmp.eq.s32.totalorder %v3381_v12, %v1444_v16 }
 0x2bd   : > { %v1736_v18 = vpop.f32.mrf.mxu2 }
 0x2c2   : > { %2295 = vmatmul.msk.f32.gmra.mxu3 %vm1498_vm6, %v2809_v4  ;;  %2272 = vmatmul.msk.f32.gmra.mxu2 %vm1515_vm1, %v2809_v4  ;;  %vm1514_vm6 = vcmp.eq.s32.totalorder %v3432_v23, %v1436_v40  ;;  %vm1531_vm1 = vcmp.eq.s32.totalorder %v3381_v12, %v1445_v62 }
 0x2c5   : > { %v1739_v63 = vpop.f32.mrf.mxu2 }
 0x2ca   : > { %2296 = vmatmul.msk.f32.gmra.mxu3 %vm1500_vm8, %v2809_v4  ;;  %2273 = vmatmul.msk.f32.gmra.mxu2 %vm1517_vm3, %v2809_v4  ;;  %vm1516_vm8 = vcmp.eq.s32.totalorder %v3432_v23, %v1437_v49  ;;  %vm1533_vm3 = vcmp.eq.s32.totalorder %v3381_v12, %v1446_v14 }
 0x2cd   : > { %v1742_v5 = vpop.f32.mrf.mxu2 }
 0x2d2   : > { %2297 = vmatmul.msk.f32.gmra.mxu3 %vm1502_vm10, %v2809_v4  ;;  %2274 = vmatmul.msk.f32.gmra.mxu2 %vm1519_vm5, %v2809_v4  ;;  %vm1518_vm10 = vcmp.eq.s32.totalorder %v3432_v23, %v1438_v6  ;;  %vm1535_vm5 = vcmp.eq.s32.totalorder %v3381_v12, %v1447_v61  ;;  %v1455_v6 = vadd.s32 224, %v3378_v11 }
 0x2d5   : > { %v1745_v25 = vpop.f32.mrf.mxu2 }
 0x2da   : > { %2298 = vmatmul.msk.f32.gmra.mxu3 %vm1504_vm12, %v2809_v4  ;;  %2275 = vmatmul.msk.f32.gmra.mxu2 %vm1521_vm7, %v2809_v4  ;;  %vm1520_vm12 = vcmp.eq.s32.totalorder %v3432_v23, %v1439_v8  ;;  %vm1537_vm7 = vcmp.eq.s32.totalorder %v3381_v12, %v1448_v32 }
 0x2e2   : > { %2299 = vmatmul.msk.f32.gmra.mxu3 %vm1506_vm14, %v2809_v4  ;;  %2276 = vmatmul.msk.f32.gmra.mxu2 %vm1523_vm9, %v2809_v4  ;;  %vm1522_vm14 = vcmp.eq.s32.totalorder %v3432_v23, %v1440_v41  ;;  %vm1539_vm9 = vcmp.eq.s32.totalorder %v3381_v12, %v1449_v35  ;;  %v1695_v41 = vld [vmem:[#allocation11 + $0x40] sm:$0xff] }
 0x2ea   : > { %2300 = vmatmul.msk.f32.gmra.mxu3 %vm1508_vm0, %v2809_v4  ;;  %2277 = vmatmul.msk.f32.gmra.mxu2 %vm1525_vm11, %v2809_v4  ;;  %vm1524_vm0 = vcmp.eq.s32.totalorder %v3432_v23, %v1441_v54  ;;  %vm1541_vm11 = vcmp.eq.s32.totalorder %v3381_v12, %v1450_v7 }
 0x2ed   : > { %v1748_v27 = vpop.f32.mrf.mxu2 }
 0x2f2   : > { %2301 = vmatmul.msk.f32.gmra.mxu3 %vm1510_vm2, %v2809_v4  ;;  %2278 = vmatmul.msk.f32.gmra.mxu2 %vm1527_vm13, %v2809_v4  ;;  %vm1526_vm2 = vcmp.eq.s32.totalorder %v3432_v23, %v1442_v9  ;;  %vm1543_vm13 = vcmp.eq.s32.totalorder %v3381_v12, %v1451_v10 }
 0x2fa   : > { %2302 = vmatmul.msk.f32.gmra.mxu3 %vm1512_vm4, %v2809_v4  ;;  %2279 = vmatmul.msk.f32.gmra.mxu2 %vm1529_vm15, %v2809_v4  ;;  %vm1528_vm4 = vcmp.eq.s32.totalorder %v3432_v23, %v1443_v50  ;;  %vm1545_vm15 = vcmp.eq.s32.totalorder %v3381_v12, %v1452_v38 }
 0x302   : > { %2303 = vmatmul.msk.f32.gmra.mxu3 %vm1514_vm6, %v2809_v4  ;;  %2280 = vmatmul.msk.f32.gmra.mxu2 %vm1531_vm1, %v2809_v4  ;;  %vm1530_vm6 = vcmp.eq.s32.totalorder %v3432_v23, %v1444_v16  ;;  %vm1547_vm1 = vcmp.eq.s32.totalorder %v3381_v12, %v1453_v53 }
 0x30a   : > { %2304 = vmatmul.msk.f32.gmra.mxu3 %vm1516_vm8, %v2809_v4  ;;  %2281 = vmatmul.msk.f32.gmra.mxu2 %vm1533_vm3, %v2809_v4  ;;  %vm1532_vm8 = vcmp.eq.s32.totalorder %v3432_v23, %v1445_v62  ;;  %vm1549_vm3 = vcmp.eq.s32.totalorder %v3381_v12, %v1454_v42 }
 0x312   : > { %2305 = vmatmul.msk.f32.gmra.mxu3 %vm1518_vm10, %v2809_v4  ;;  %2282 = vmatmul.msk.f32.gmra.mxu2 %vm1535_vm5, %v2809_v4  ;;  %vm1534_vm10 = vcmp.eq.s32.totalorder %v3432_v23, %v1446_v14  ;;  %vm1551_vm5 = vcmp.eq.s32.totalorder %v3381_v12, %v1455_v6 }
 0x31a   : > { %2306 = vmatmul.msk.f32.gmra.mxu3 %vm1520_vm12, %v2809_v4  ;;  %2283 = vmatmul.msk.f32.gmra.mxu2 %vm1537_vm7, %v2809_v4  ;;  %vm1536_vm12 = vcmp.eq.s32.totalorder %v3432_v23, %v1447_v61 }
 0x31d   : > { %v1751_v19 = vpop.f32.mrf.mxu2 }
 0x322   : > { %2307 = vmatmul.msk.f32.gmra.mxu3 %vm1522_vm14, %v2809_v4  ;;  %2284 = vmatmul.msk.f32.gmra.mxu2 %vm1539_vm9, %v2809_v4  ;;  %vm1538_vm14 = vcmp.eq.s32.totalorder %v3432_v23, %v1448_v32  ;;  %v1458_v32 = vadd.s32 248, %v3378_v11 }
 0x325   : > { %v1754_v39 = vpop.f32.mrf.mxu2 }
 0x32a   : > { %2308 = vmatmul.msk.f32.gmra.mxu3 %vm1524_vm0, %v2809_v4  ;;  %2285 = vmatmul.msk.f32.gmra.mxu2 %vm1541_vm11, %v2809_v4  ;;  %vm1540_vm0 = vcmp.eq.s32.totalorder %v3432_v23, %v1449_v35  ;;  %vm1557_vm11 = vcmp.eq.s32.totalorder %v3381_v12, %v1458_v32 }
 0x32d   : > { %v1757_v46 = vpop.f32.mrf.mxu2 }
 0x332   : > { %2309 = vmatmul.msk.f32.gmra.mxu3 %vm1526_vm2, %v2809_v4  ;;  %2286 = vmatmul.msk.f32.gmra.mxu2 %vm1543_vm13, %v2809_v4  ;;  %vm1542_vm2 = vcmp.eq.s32.totalorder %v3432_v23, %v1450_v7 }
 0x335   : > { %v1760_v22 = vpop.f32.mrf.mxu2 }
 0x33a   : > { %2310 = vmatmul.msk.f32.gmra.mxu3 %vm1528_vm4, %v2809_v4  ;;  %2287 = vmatmul.msk.f32.gmra.mxu2 %vm1545_vm15, %v2809_v4  ;;  %vm1544_vm4 = vcmp.eq.s32.totalorder %v3432_v23, %v1451_v10  ;;  %vm1558_vm15 = vcmp.eq.s32.totalorder %v3432_v23, %v1458_v32 }
 0x33d   : > { %v1849_v26 = vpop.f32.mrf.mxu3  ;;  %v1763_v57 = vpop.f32.mrf.mxu2 }
 0x33e   : > { %v1850_v28 = vadd.f32 %v1849_v26, %v1736_v18  ;;  %v1456_v18 = vadd.s32 232, %v3378_v11 }
 0x340   : > { %v1945_v30 = vadd.f32 %v1850_v28, %v1687_v55  ;;  %vm1553_vm7 = vcmp.eq.s32.totalorder %v3381_v12, %v1456_v18  ;;  %v1697_v55 = vld [vmem:[#allocation11 + $0x50] sm:$0xff]  ;;  %vm1554_vm13 = vcmp.eq.s32.totalorder %v3432_v23, %v1456_v18 }
 0x342   : > { %1977 = vst [vmem:[#allocation11] sm:$0xff] %v1945_v30  ;;  %2311 = vmatmul.msk.f32.gmra.mxu3 %vm1530_vm6, %v2809_v4  ;;  %2288 = vmatmul.msk.f32.gmra.mxu2 %vm1547_vm1, %v2809_v4  ;;  %vm1546_vm6 = vcmp.eq.s32.totalorder %v3432_v23, %v1452_v38 }
 0x345   : > { %v1852_v33 = vpop.f32.mrf.mxu3  ;;  %v1766_v1 = vpop.f32.mrf.mxu2 }
 0x346   : > { %v1853_v51 = vadd.f32 %v1852_v33, %v1739_v63  ;;  %v1696_v63 = vld [vmem:[#allocation11 + $0x48] sm:$0xff] }
 0x348   : > { %v1946_v36 = vadd.f32 %v1853_v51, %v1688_v47  ;;  %v1698_v47 = vld [vmem:[#allocation11 + $0x58] sm:$0xff] }
 0x34a   : > { %1978 = vst [vmem:[#allocation11 + $0x8] sm:$0xff] %v1946_v36  ;;  %2312 = vmatmul.msk.f32.gmra.mxu3 %vm1532_vm8, %v2809_v4  ;;  %2289 = vmatmul.msk.f32.gmra.mxu2 %vm1549_vm3, %v2809_v4  ;;  %vm1548_vm8 = vcmp.eq.s32.totalorder %v3432_v23, %v1453_v53  ;;  %v1699_v36 = vld [vmem:[#allocation11 + $0x60] sm:$0xff] }
 0x34d   : > { %v1855_v37 = vpop.f32.mrf.mxu3  ;;  %v1769_v40 = vpop.f32.mrf.mxu2 }
 0x34e   : > { %v1856_v24 = vadd.f32 %v1855_v37, %v1742_v5 }
 0x350   : > { %v1947_v44 = vadd.f32 %v1856_v24, %v1689_v13 }
 0x352   : > { %1979 = vst [vmem:[#allocation11 + $0x10] sm:$0xff] %v1947_v44  ;;  %2313 = vmatmul.msk.f32.gmra.mxu3 %vm1534_vm10, %v2809_v4  ;;  %2290 = vmatmul.msk.f32.gmra.mxu2 %vm1551_vm5, %v2809_v4  ;;  %vm1550_vm10 = vcmp.eq.s32.totalorder %v3432_v23, %v1454_v42 }
 0x355   : > { %v1858_v45 = vpop.f32.mrf.mxu3  ;;  %v1772_v9 = vpop.f32.mrf.mxu2 }
 0x356   : > { %v1859_v31 = vadd.f32 %v1858_v45, %v1745_v25  ;;  %v1457_v25 = vadd.s32 240, %v3378_v11  ;;  %v1701_v45 = vld [vmem:[#allocation11 + $0x70] sm:$0xff] }
 0x358   : > { %v1948_v17 = vadd.f32 %v1859_v31, %v1690_v48  ;;  %vm1555_vm9 = vcmp.eq.s32.totalorder %v3381_v12, %v1457_v25 }
 0x35a   : > { %1980 = vst [vmem:[#allocation11 + $0x18] sm:$0xff] %v1948_v17  ;;  %2314 = vmatmul.msk.f32.gmra.mxu3 %vm1536_vm12, %v2809_v4  ;;  %2291 = vmatmul.msk.f32.gmra.mxu2 %vm1553_vm7, %v2809_v4  ;;  %vm1552_vm12 = vcmp.eq.s32.totalorder %v3432_v23, %v1455_v6  ;;  %v1707_v6 = vld [vmem:[#allocation11 + $0xa0] sm:$0xff] }
 0x35d   : > { %v1861_v58 = vpop.f32.mrf.mxu3  ;;  %v1775_v5 = vpop.f32.mrf.mxu2 }
 0x35e   : > { %v1862_v52 = vadd.f32 %v1861_v58, %v1748_v27 }
 0x360   : > { %v1949_v34 = vadd.f32 %v1862_v52, %v1691_v29  ;;  %v1702_v29 = vld [vmem:[#allocation11 + $0x78] sm:$0xff] }
 0x362   : > { %1981 = vst [vmem:[#allocation11 + $0x20] sm:$0xff] %v1949_v34  ;;  %2315 = vmatmul.msk.f32.gmra.mxu3 %vm1538_vm14, %v2809_v4  ;;  %2292 = vmatmul.msk.f32.gmra.mxu2 %vm1555_vm9, %v2809_v4  ;;  %vm1556_vm14 = vcmp.eq.s32.totalorder %v3432_v23, %v1457_v25  ;;  %v1703_v34 = vld [vmem:[#allocation11 + $0x80] sm:$0xff] }
 0x365   : > { %v1864_v15 = vpop.f32.mrf.mxu3  ;;  %v1778_v27 = vpop.f32.mrf.mxu2 }
 0x366   : > { %v1865_v59 = vadd.f32 %v1864_v15, %v1751_v19 }
 0x368   : > { %v1950_v60 = vadd.f32 %v1865_v59, %v1692_v56  ;;  %v1704_v59 = vld [vmem:[#allocation11 + $0x88] sm:$0xff] }
 0x36a   : > { %1982 = vst [vmem:[#allocation11 + $0x28] sm:$0xff] %v1950_v60  ;;  %2316 = vmatmul.msk.f32.gmra.mxu3 %vm1540_vm0, %v2809_v4  ;;  %2293 = vmatmul.msk.f32.gmra.mxu2 %vm1557_vm11, %v2809_v4 }
 0x36d   : > { %v1867_v43 = vpop.f32.mrf.mxu3  ;;  %v1781_v19 = vpop.f32.mrf.mxu2 }
 0x36e   : > { %v1868_v0 = vadd.f32 %v1867_v43, %v1754_v39  ;;  %v1700_v39 = vld [vmem:[#allocation11 + $0x68] sm:$0xff]  ;;  %v1705_v43 = vld [vmem:[#allocation11 + $0x90] sm:$0xff] }
 0x370   : > { %v1951_v21 = vadd.f32 %v1868_v0, %v1693_v3 }
 0x372   : > { %1983 = vst [vmem:[#allocation11 + $0x30] sm:$0xff] %v1951_v21  ;;  %2317 = vmatmul.msk.f32.gmra.mxu3 %vm1542_vm2, %v2809_v4  ;;  %v1706_v21 = vld [vmem:[#allocation11 + $0x98] sm:$0xff] }
 0x375   : > { %v1870_v2 = vpop.f32.mrf.mxu3  ;;  %v1784_v13 = vpop.f32.mrf.mxu2 }
 0x376   : > { %v1871_v49 = vadd.f32 %v1870_v2, %v1757_v46 }
 0x378   : > { %v1952_v8 = vadd.f32 %v1871_v49, %v1694_v20 }
 0x37a   : > { %1984 = vst [vmem:[#allocation11 + $0x38] sm:$0xff] %v1952_v8  ;;  %2318 = vmatmul.msk.f32.gmra.mxu3 %vm1544_vm4, %v2809_v4 }
 0x37d   : > { %v1873_v54 = vpop.f32.mrf.mxu3  ;;  %v1787_v44 = vpop.f32.mrf.mxu2 }
 0x37e   : > { %v1874_v50 = vadd.f32 %v1873_v54, %v1760_v22 }
 0x380   : > { %v1953_v16 = vadd.f32 %v1874_v50, %v1695_v41  ;;  %v1708_v50 = vld [vmem:[#allocation11 + $0xa8] sm:$0xff] }
 0x382   : > { %1985 = vst [vmem:[#allocation11 + $0x40] sm:$0xff] %v1953_v16  ;;  %2319 = vmatmul.msk.f32.gmra.mxu3 %vm1546_vm6, %v2809_v4 }
 0x385   : > { %v1876_v62 = vpop.f32.mrf.mxu3  ;;  %v1790_v17 = vpop.f32.mrf.mxu2 }
 0x386   : > { %v1877_v14 = vadd.f32 %v1876_v62, %v1763_v57  ;;  %v1709_v62 = vld [vmem:[#allocation11 + $0xb0] sm:$0xff] }
 0x388   : > { %v1954_v61 = vadd.f32 %v1877_v14, %v1696_v63 }
 0x38a   : > { %1986 = vst [vmem:[#allocation11 + $0x48] sm:$0xff] %v1954_v61  ;;  %2320 = vmatmul.msk.f32.gmra.mxu3 %vm1548_vm8, %v2809_v4 }
 0x38d   : > { %v1879_v26 = vpop.f32.mrf.mxu3  ;;  %v1793_v38 = vpop.f32.mrf.mxu2 }
 0x38e   : > { %v1880_v28 = vadd.f32 %v1879_v26, %v1766_v1 }
 0x390   : > { %v1955_v30 = vadd.f32 %v1880_v28, %v1697_v55  ;;  %v1710_v55 = vld [vmem:[#allocation11 + $0xb8] sm:$0xff] }
 0x392   : > { %1987 = vst [vmem:[#allocation11 + $0x50] sm:$0xff] %v1955_v30  ;;  %2321 = vmatmul.msk.f32.gmra.mxu3 %vm1550_vm10, %v2809_v4  ;;  %v1711_v30 = vld [vmem:[#allocation11 + $0xc0] sm:$0xff] }
 0x395   : > { %v1882_v33 = vpop.f32.mrf.mxu3  ;;  %v1796_v60 = vpop.f32.mrf.mxu2 }
 0x396   : > { %v1883_v51 = vadd.f32 %v1882_v33, %v1769_v40 }
 0x398   : > { %v1956_v35 = vadd.f32 %v1883_v51, %v1698_v47 }
 0x39a   : > { %1988 = vst [vmem:[#allocation11 + $0x58] sm:$0xff] %v1956_v35  ;;  %2322 = vmatmul.msk.f32.gmra.mxu3 %vm1552_vm12, %v2809_v4  ;;  %v1712_v35 = vld [vmem:[#allocation11 + $0xc8] sm:$0xff] }
 0x39d   : > { %v1885_v11 = vpop.f32.mrf.mxu3  ;;  %v1799_v0 = vpop.f32.mrf.mxu2 }
 0x39e   : > { %v1886_v37 = vadd.f32 %v1885_v11, %v1772_v9 }
 0x3a0   : > { %v1957_v12 = vadd.f32 %v1886_v37, %v1699_v36 }
 0x3a2   : > { %1989 = vst [vmem:[#allocation11 + $0x60] sm:$0xff] %v1957_v12  ;;  %2323 = vmatmul.msk.f32.gmra.mxu3 %vm1554_vm13, %v2809_v4  ;;  %v1713_v12 = vld [vmem:[#allocation11 + $0xd0] sm:$0xff] }
 0x3a5   : > { %v1888_v24 = vpop.f32.mrf.mxu3  ;;  %v1802_v49 = vpop.f32.mrf.mxu2 }
 0x3a6   : > { %v1889_v7 = vadd.f32 %v1888_v24, %v1775_v5 }
 0x3a8   : > { %v1958_v48 = vadd.f32 %v1889_v7, %v1700_v39 }
 0x3aa   : > { %1990 = vst [vmem:[#allocation11 + $0x68] sm:$0xff] %v1958_v48  ;;  %2324 = vmatmul.msk.f32.gmra.mxu3 %vm1556_vm14, %v2809_v4 }
 0x3ad   : > { %v1891_v46 = vpop.f32.mrf.mxu3  ;;  %v1805_v9 = vpop.f32.mrf.mxu2 }
 0x3ae   : > { %v1892_v31 = vadd.f32 %v1891_v46, %v1778_v27 }
 0x3b0   : > { %v1959_v10 = vadd.f32 %v1892_v31, %v1701_v45 }
 0x3b2   : > { %1991 = vst [vmem:[#allocation11 + $0x70] sm:$0xff] %v1959_v10  ;;  %2325 = vmatmul.msk.f32.gmra.mxu3 %vm1558_vm15, %v2809_v4  ;;  %v1715_v10 = vld [vmem:[#allocation11 + $0xe0] sm:$0xff] }
 0x3b5   : > { %v1894_v58 = vpop.f32.mrf.mxu3  ;;  %v1808_v14 = vpop.f32.mrf.mxu2 }
 0x3b6   : > { %v1895_v22 = vadd.f32 %v1894_v58, %v1781_v19 }
 0x3b8   : > { %v1960_v52 = vadd.f32 %v1895_v22, %v1702_v29 }
 0x3ba   : > { %1992 = vst [vmem:[#allocation11 + $0x78] sm:$0xff] %v1960_v52  ;;  %v1716_v52 = vld [vmem:[#allocation11 + $0xe8] sm:$0xff] }
 0x3bd   : > { %v1897_v56 = vpop.f32.mrf.mxu3  ;;  %v1811_v28 = vpop.f32.mrf.mxu2 }
 0x3be   : > { %v1898_v15 = vadd.f32 %v1897_v56, %v1784_v13 }
 0x3c0   : > { %v1961_v57 = vadd.f32 %v1898_v15, %v1703_v34 }
 0x3c2   : > { %1993 = vst [vmem:[#allocation11 + $0x80] sm:$0xff] %v1961_v57  ;;  %v1717_v57 = vld [vmem:[#allocation11 + $0xf0] sm:$0xff] }
 0x3c5   : > { %v1900_v53 = vpop.f32.mrf.mxu3  ;;  %v1814_v51 = vpop.f32.mrf.mxu2 }
 0x3c6   : > { %v1901_v23 = vadd.f32 %v1900_v53, %v1787_v44  ;;  %v1714_v44 = vld [vmem:[#allocation11 + $0xd8] sm:$0xff] }
 0x3c8   : > { %v1962_v3 = vadd.f32 %v1901_v23, %v1704_v59 }
 0x3ca   : > { %1994 = vst [vmem:[#allocation11 + $0x88] sm:$0xff] %v1962_v3  ;;  %v1718_v3 = vld [vmem:[#allocation11 + $0xf8] sm:$0xff] }
 0x3cd   : > { %v1903_v1 = vpop.f32.mrf.mxu3  ;;  %v1817_v37 = vpop.f32.mrf.mxu2 }
 0x3ce   : > { %v1904_v4 = vadd.f32 %v1903_v1, %v1790_v17 }
 0x3d0   : > { %v1963_v42 = vadd.f32 %v1904_v4, %v1705_v43 }
 0x3d2   : > { %1995 = vst [vmem:[#allocation11 + $0x90] sm:$0xff] %v1963_v42 }
 0x3d5   : > { %v1906_v20 = vpop.f32.mrf.mxu3  ;;  %v1820_v45 = vpop.f32.mrf.mxu2 }
 0x3d6   : > { %v1907_v2 = vadd.f32 %v1906_v20, %v1793_v38 }
 0x3d8   : > { %v1964_v40 = vadd.f32 %v1907_v2, %v1706_v21 }
 0x3da   : > { %1996 = vst [vmem:[#allocation11 + $0x98] sm:$0xff] %v1964_v40 }
 0x3dd   : > { %v1909_v8 = vpop.f32.mrf.mxu3  ;;  %v1823_v58 = vpop.f32.mrf.mxu2 }
 0x3de   : > { %v1910_v41 = vadd.f32 %v1909_v8, %v1796_v60 }
 0x3e0   : > { %v1965_v54 = vadd.f32 %v1910_v41, %v1707_v6 }
 0x3e2   : > { %1997 = vst [vmem:[#allocation11 + $0xa0] sm:$0xff] %v1965_v54 }
 0x3e5   : > { %v1912_v18 = vpop.f32.mrf.mxu3  ;;  %v1826_v15 = vpop.f32.mrf.mxu2 }
 0x3e6   : > { %v1913_v16 = vadd.f32 %v1912_v18, %v1799_v0 }
 0x3e8   : > { %v1966_v63 = vadd.f32 %v1913_v16, %v1708_v50 }
 0x3ea   : > { %1998 = vst [vmem:[#allocation11 + $0xa8] sm:$0xff] %v1966_v63 }
 0x3ed   : > { %v1915_v5 = vpop.f32.mrf.mxu3  ;;  %v1829_v23 = vpop.f32.mrf.mxu2 }
 0x3ee   : > { %v1916_v25 = vadd.f32 %v1915_v5, %v1802_v49 }
 0x3f0   : > { %v1967_v61 = vadd.f32 %v1916_v25, %v1709_v62 }
 0x3f2   : > { %1999 = vst [vmem:[#allocation11 + $0xb0] sm:$0xff] %v1967_v61 }
 0x3f5   : > { %v1918_v26 = vpop.f32.mrf.mxu3 }
 0x3f6   : > { %v1919_v27 = vadd.f32 %v1918_v26, %v1805_v9 }
 0x3f8   : > { %v1968_v32 = vadd.f32 %v1919_v27, %v1710_v55 }
 0x3fa   : > { %2000 = vst [vmem:[#allocation11 + $0xb8] sm:$0xff] %v1968_v32 }
 0x3fd   : > { %v1921_v47 = vpop.f32.mrf.mxu3 }
 0x3fe   : > { %v1922_v33 = vadd.f32 %v1921_v47, %v1808_v14 }
 0x400   : > { %v1969_v19 = vadd.f32 %v1922_v33, %v1711_v30 }
 0x402   : > { %2001 = vst [vmem:[#allocation11 + $0xc0] sm:$0xff] %v1969_v19 }
 0x405   : > { %v1924_v36 = vpop.f32.mrf.mxu3 }
 0x406   : > { %v1925_v11 = vadd.f32 %v1924_v36, %v1811_v28 }
 0x408   : > { %v1970_v13 = vadd.f32 %v1925_v11, %v1712_v35 }
 0x40a   : > { %2002 = vst [vmem:[#allocation11 + $0xc8] sm:$0xff] %v1970_v13 }
 0x40d   : > { %v1927_v39 = vpop.f32.mrf.mxu3 }
 0x40e   : > { %v1928_v24 = vadd.f32 %v1927_v39, %v1814_v51 }
 0x410   : > { %v1971_v7 = vadd.f32 %v1928_v24, %v1713_v12 }
 0x412   : > { %2003 = vst [vmem:[#allocation11 + $0xd0] sm:$0xff] %v1971_v7 }
 0x415   : > { %v1930_v48 = vpop.f32.mrf.mxu3 }
 0x416   : > { %v1931_v46 = vadd.f32 %v1930_v48, %v1817_v37 }
 0x418   : > { %v1972_v31 = vadd.f32 %v1931_v46, %v1714_v44 }
 0x41a   : > { %2004 = vst [vmem:[#allocation11 + $0xd8] sm:$0xff] %v1972_v31 }
 0x41d   : > { %v1933_v17 = vpop.f32.mrf.mxu3 }
 0x41e   : > { %v1934_v29 = vadd.f32 %v1933_v17, %v1820_v45 }
 0x420   : > { %v1973_v22 = vadd.f32 %v1934_v29, %v1715_v10 }
 0x422   : > { %2005 = vst [vmem:[#allocation11 + $0xe0] sm:$0xff] %v1973_v22 }
 0x425   : > { %v1936_v38 = vpop.f32.mrf.mxu3 }
 0x426   : > { %v1937_v34 = vadd.f32 %v1936_v38, %v1823_v58 }
 0x428   : > { %v1974_v56 = vadd.f32 %v1937_v34, %v1716_v52 }
 0x42a   : > { %2006 = vst [vmem:[#allocation11 + $0xe8] sm:$0xff] %v1974_v56 }
 0x42d   : > { %v1939_v59 = vpop.f32.mrf.mxu3 }
 0x42e   : > { %v1940_v53 = vadd.f32 %v1939_v59, %v1826_v15 }
 0x430   : > { %v1975_v60 = vadd.f32 %v1940_v53, %v1717_v57 }
 0x432   : > { %2007 = vst [vmem:[#allocation11 + $0xf0] sm:$0xff] %v1975_v60 }
 0x435   : > { %v1942_v43 = vpop.f32.mrf.mxu3 }
 0x436   : > { %v1943_v1 = vadd.f32 %v1942_v43, %v1829_v23 }
 0x438   : > { %v1976_v4 = vadd.f32 %v1943_v1, %v1718_v3 }
 0x43a   : > { %2008 = vst [vmem:[#allocation11 + $0xf8] sm:$0xff] %v1976_v4 }
 0x43b   : > { %2347 = dma.vmem_to_hbm [thread:$0]  (%p2372_p1), %s2018_s3, 4096, %s2020_s18, [#allocation4], %s2811_s12, %s2811_s12, %s2812_s14  }
 0x43c   : > { %2777 = dma.done.wait (%p2372_p1), [#allocation4], 4096  }
 0x43d   : > { %2779 = vsyncadd (%p2372_p1), [#allocation4], 4294963200 }
 0x43e PF: > { %s25_s29 = sadd.s32 1, %s2802_s29   ;;  %s3640_s1 = sld [smem:[#allocation16_spill]] }
 0x43f   : > { %p22_p3 = scmp.ge.s32.totalorder %s25_s29, 5   ;;  %s3641_s26 = sld [smem:[#allocation18_spill]] }
 0x440   : > { %s3642_s5 = sld [smem:[#allocation17_spill]]  ;;  %s3643_s24 = smov %s2786_s25 }
 0x441   : > { %s3645_s27 = smov %s2798_s28 }
 0x442   :  { %24 = sbr.rel (!%p22_p3) target bundleno = 14 (0xe), region = 122 }
 0x444   : > { %s3644_s25 = smov %s3640_s1 }
 0x446   : > { %s3646_s28 = smov %s3642_s5 }
 0x447   :  { %2036 = vsyncpa [#allocation3], 1 }
 0x448   :  { %2038 = vsyncpa [#allocation3 + $0x1], 1 }
 0x449   :  { %2039 = vsyncpa [#allocation6], 1 }
 0x44a   :  { %2041 = vsyncpa [#allocation6 + $0x1], 1 }
 0x44b   :  { %2042 = vsyncpa [#allocation9], 1 }
 0x44c   :  { %2043 = vsyncpa [#allocation4], 1 }
 0x44d   :  { %2045 = vsyncpa [#allocation4 + $0x1], 1 }

</bundles_post_ra>
